<compile_context>
chip_gen: v7x
topology: tpu7x:2x2x1
jax: 0.10.0
libtpu: 0.0.40
codegen_flags: <defaults>
</compile_context>

<pallas_src>
import functools

import jax
import jax.numpy as jnp
from jax import lax
from jax.experimental import pallas as pl
from jax.experimental.pallas import tpu as pltpu

_MIB = 1024 * 1024


# ---------------------------------------------------------------------------
# Kernel bodies
# ---------------------------------------------------------------------------
def _attn_body(xq, kf, vf, tb, mx, brow, gamma, out_ref, attn_ref, value_bf16):
    """Shared attention body for one (batch, query-tile) grid step.

    xq  : (C, TQ)  raw input columns for this query tile (also the residual)
    kf  : (Ck, N)  key-side features (x itself when folded, Wk x + bk else)
    vf  : (C, N)   value projection Wv x + bv (precomputed in the wrapper)
    tb  : (1, N)   key-side rank-1 bias bq^T Wk x, or None (unfolded path)
    mx  : (C, Ck)  Wq^T Wk (folded) or Wq^T (unfolded)
    brow: (1, Ck)  bq row (unfolded) or None
    """
    xq32 = xq.astype(jnp.float32)

    # g[i, c] = sum_d xq[d, i] * mx[d, c]  -- transposed-LHS dot_general, so no
    # materialized (C, TQ) transpose through the XLU.
    g = lax.dot_general(xq32, mx.astype(jnp.float32),
                        (((0,), (0,)), ((), ())),
                        preferred_element_type=jnp.float32)            # (TQ, Ck)
    if brow is not None:
        g = g + brow

    energy = jnp.dot(g, kf.astype(jnp.float32),
                     preferred_element_type=jnp.float32)               # (TQ, N)
    if tb is not None:
        # NOTE: the per-query-row constants (x_i.Wq^T.bk + bq.bk) are omitted;
        # softmax over the key axis is exactly invariant to them.
        energy = energy + tb

    # Numerically stable softmax over keys (last dim = lane axis).
    mrow = jnp.max(energy, axis=-1, keepdims=True)
    p = jnp.exp(energy - mrow)
    attn = p * pl.reciprocal(jnp.sum(p, axis=-1, keepdims=True), approx=False)

    # out[c, i] = sum_j vf[c, j] * attn[i, j]  -- contract both lane axes
    # (same Q@K^T-style dot_general that flash attention uses on the MXU).
    probs = attn.astype(jnp.bfloat16) if value_bf16 else attn
    out_ct = lax.dot_general(vf, probs, (((1,), (1,)), ((), ())),
                             preferred_element_type=jnp.float32)       # (C, TQ)

    out_ref[0] = (gamma * out_ct + xq32).astype(out_ref.dtype)
    attn_ref[0] = attn.astype(attn_ref.dtype)


def _kernel_folded(x_ref, vf_ref, tb_ref, mx_ref, sc_ref, out_ref, attn_ref,
                   *, tq, value_bf16):
    # x_ref : (1, C, N) full x (keys, query slice and residual all come from it)
    start = pl.multiple_of(pl.program_id(1) * tq, tq)
    xq = x_ref[0, :, pl.ds(start, tq)]                                 # (C, TQ)
    _attn_body(xq, x_ref[0], vf_ref[0], tb_ref[0], mx_ref[...], None,
               sc_ref[0], out_ref, attn_ref, value_bf16)


def _kernel_unfolded(xq_ref, kf_ref, vf_ref, mx_ref, brow_ref, sc_ref,
                     out_ref, attn_ref, *, value_bf16):
    _attn_body(xq_ref[0], kf_ref[0], vf_ref[0], None, mx_ref[...],
               brow_ref[...], sc_ref[0], out_ref, attn_ref, value_bf16)


# ---------------------------------------------------------------------------
# Tile / VMEM sizing (generation aware)
# ---------------------------------------------------------------------------
def _vmem_capacity_bytes():
    try:
        return int(pltpu.get_tpu_info().vmem_capacity_bytes)
    except Exception:
        return 64 * _MIB  # conservative fallback (v7x per-core capacity)


def _estimate_vmem(c, ck, n, tq):
    f = 4  # f32
    resident = 2 * f * (ck * n + c * n + n + c * ck)          # x/K, V, tb, M
    blocked = 2 * f * (c * tq + tq * n + c * tq)              # out, attn, (xq)
    temps = f * (4 * tq * n + tq * ck + 2 * c * tq)           # energy/p/attn/...
    return resident + blocked + temps


def _pick_query_tile(n, c, ck, batch, vmem_cap):
    if n % 128 != 0:
        # Lane-sparse fallback (masked partial stores); pad W*H upstream if hot.
        return n
    budget = int(0.55 * vmem_cap)
    cands = [t for t in (1024, 512, 256, 128) if t <= n and n % t == 0]
    fitting = [t for t in cands if _estimate_vmem(c, ck, n, t) <= budget]
    if not fitting:
        return 128
    multi = [t for t in fitting if n // t >= 2]               # keep pipelining real
    pool = multi if multi else fitting
    even = [t for t in pool if (batch * (n // t)) % 2 == 0]   # balance v7x cores
    return (even or pool)[0]


def _vmem_limit_bytes(est, vmem_cap):
    # Generous headroom, but never request more than ~85% of physical VMEM
    # (v7x: 64 MiB; v5e/v6e: 128 MiB -- no more fixed 48 MiB clamp).
    return int(min(max(2 * est, 32 * _MIB), int(0.85 * vmem_cap)))


# ---------------------------------------------------------------------------
# Wrapper
# ---------------------------------------------------------------------------
def self_attn_forward(x_nchw, params, *, tq=None, fold_threshold=128,
                      value_matmul_bf16=False, attn_dtype=jnp.float32):
    """x_nchw: (B, C, W, H).  Returns (out (B,C,W,H), attention (B,N,N))."""
    wq, bq, wk, bk, wv, bv, gamma = params
    B, C, W, H = x_nchw.shape
    N = W * H
    C8 = wq.shape[0]
    f32 = jnp.float32

    folded = C <= fold_threshold           # fold is free while C <= MXU native K
    Ck = C if folded else C8

    # NCHW -> (B, C, N): pure reshape, no data movement.
    x_cn = x_nchw.reshape(B, C, N)
    x32 = x_cn.astype(f32)

    # Value projection hoisted out of the kernel (was recomputed per query tile).
    vf = (jnp.einsum('oc,bcn->bon', wv.astype(f32), x32)
          + bv.astype(f32)[None, :, None])                               # (B, C, N)
    if value_matmul_bf16:
        vf = vf.astype(jnp.bfloat16)       # halves resident VMEM + HBM read

    gamma_s = jnp.reshape(gamma, (1,)).astype(f32)                       # SMEM scalar

    vmem_cap = _vmem_capacity_bytes()
    if tq is None:
        tq = _pick_query_tile(N, C, Ck, B, vmem_cap)
    assert N % tq == 0, f"query tile {tq} must divide N={N}"
    nq = N // tq
    vmem_limit = _vmem_limit_bytes(_estimate_vmem(C, Ck, N, tq), vmem_cap)

    if folded:
        # energy = x^T (Wq^T Wk) x + (bq^T Wk) x ; query-row constants dropped
        # (softmax-invariant).
        mx = wq.astype(f32).T @ wk.astype(f32)                           # (C, C)
        uk = wk.astype(f32).T @ bq.astype(f32)                           # (C,)
        tb = jnp.einsum('c,bcn->bn', uk, x32).reshape(B, 1, N)           # (B, 1, N)
        kernel = functools.partial(_kernel_folded, tq=tq,
                                   value_bf16=value_matmul_bf16)
        inputs = (x_cn, vf, tb, mx, gamma_s)
        in_specs = [
            pl.BlockSpec((1, C, N), lambda b, qi: (b, 0, 0)),   # x (keys/query/residual)
            pl.BlockSpec((1, C, N), lambda b, qi: (b, 0, 0)),   # V = Wv x + bv
            pl.BlockSpec((1, 1, N), lambda b, qi: (b, 0, 0)),   # bq^T Wk x
            pl.BlockSpec((C, C), lambda b, qi: (0, 0)),         # Wq^T Wk
            pl.BlockSpec(memory_space=pltpu.MemorySpace.SMEM),  # gamma
        ]
    else:
        # Large C: keep the energy contraction at C//8. K is precomputed; the
        # query tile is projected in-kernel with Wq^T (tiny matmul).
        kf = (jnp.einsum('oc,bcn->bon', wk.astype(f32), x32)
              + bk.astype(f32)[None, :, None])                           # (B, C8, N)
        mx = wq.astype(f32).T                                            # (C, C8)
        brow = bq.astype(f32).reshape(1, C8)
        kernel = functools.partial(_kernel_unfolded,
                                   value_bf16=value_matmul_bf16)
        inputs = (x_cn, kf, vf, mx, brow, gamma_s)
        in_specs = [
            pl.BlockSpec((1, C, tq), lambda b, qi: (b, 0, qi)),  # x query tile
            pl.BlockSpec((1, C8, N), lambda b, qi: (b, 0, 0)),   # K = Wk x + bk
            pl.BlockSpec((1, C, N), lambda b, qi: (b, 0, 0)),    # V = Wv x + bv
            pl.BlockSpec((C, C8), lambda b, qi: (0, 0)),         # Wq^T
            pl.BlockSpec((1, C8), lambda b, qi: (0, 0)),         # bq
            pl.BlockSpec(memory_space=pltpu.MemorySpace.SMEM),   # gamma
        ]

    out_cn, attn = pl.pallas_call(
        kernel,
        out_shape=(
            jax.ShapeDtypeStruct((B, C, N), x_nchw.dtype),
            jax.ShapeDtypeStruct((B, N, N), attn_dtype),
        ),
        grid_spec=pltpu.PrefetchScalarGridSpec(
            num_scalar_prefetch=0,
            grid=(B, nq),
            in_specs=in_specs,
            out_specs=[
                pl.BlockSpec((1, C, tq), lambda b, qi: (b, 0, qi)),   # out tile
                pl.BlockSpec((1, tq, N), lambda b, qi: (b, qi, 0)),   # attention tile
            ],
        ),
        compiler_params=pltpu.CompilerParams(
            dimension_semantics=("parallel", "parallel"),
            vmem_limit_bytes=vmem_limit,
        ),
    )(*inputs)

    out = out_cn.reshape(B, C, W, H)
    return out, attn


# ---------------------------------------------------------------------------
# Pure-JAX reference (matches the PyTorch module exactly)
# ---------------------------------------------------------------------------
def _reference_forward(x_nchw, params):
    wq, bq, wk, bk, wv, bv, gamma = params
    B, C, W, H = x_nchw.shape
    N = W * H
    x_cn = x_nchw.reshape(B, C, N)
    q = jnp.einsum('oc,bcn->bon', wq, x_cn) + bq[None, :, None]
    k = jnp.einsum('oc,bcn->bon', wk, x_cn) + bk[None, :, None]
    v = jnp.einsum('oc,bcn->bon', wv, x_cn) + bv[None, :, None]
    energy = jnp.einsum('bnc,bcm->bnm', jnp.transpose(q, (0, 2, 1)), k)
    attention = jax.nn.softmax(energy, axis=-1)
    out = jnp.einsum('bcn,bmn->bcm', v, attention).reshape(B, C, W, H)
    out = gamma[0] * out + x_nchw
    return out, attention


def init_params(key, in_dim):
    """Deterministic init of Self_Attn parameters (gamma starts at 0, matching
    nn.Parameter(torch.zeros(1)))."""
    c8 = in_dim // 8
    ks = jax.random.split(key, 6)
    scale = 1.0 / jnp.sqrt(in_dim)
    wq = jax.random.uniform(ks[0], (c8, in_dim), jnp.float32, -scale, scale)
    bq = jax.random.uniform(ks[1], (c8,), jnp.float32, -scale, scale)
    wk = jax.random.uniform(ks[2], (c8, in_dim), jnp.float32, -scale, scale)
    bk = jax.random.uniform(ks[3], (c8,), jnp.float32, -scale, scale)
    wv = jax.random.uniform(ks[4], (in_dim, in_dim), jnp.float32, -scale, scale)
    bv = jax.random.uniform(ks[5], (in_dim,), jnp.float32, -scale, scale)
    gamma = jnp.zeros((1,), jnp.float32)
    return (wq, bq, wk, bk, wv, bv, gamma)


if __name__ == "__main__":
    key = jax.random.PRNGKey(0)
    k_x, k_p, k_x2, k_p2 = jax.random.split(key, 4)

    # --- Test 1: folded Q/K path (C <= 128) -------------------------------
    B, C, W, H = 2, 32, 16, 16                 # N = 256 -> TQ = 128, grid (2, 2)
    x = jax.random.normal(k_x, (B, C, W, H), jnp.float32)
    params = init_params(k_p, C)
    # nonzero gamma so the attention path actually contributes to `out`
    params = params[:-1] + (jnp.array([0.5], jnp.float32),)

    out, attn = jax.block_until_ready(self_attn_forward(x, params))
    out_ref, attn_ref = _reference_forward(x, params)
    assert out.shape == (B, C, W, H) and attn.shape == (B, W * H, W * H)
    assert jnp.allclose(out, out_ref, atol=1e-4, rtol=1e-4)
    assert jnp.allclose(attn, attn_ref, atol=2e-5, rtol=1e-4)

    # --- Test 2: unfolded path (C > 128 keeps the energy contraction C//8) --
    B2, C2, W2, H2 = 1, 256, 16, 16
    x2 = jax.random.normal(k_x2, (B2, C2, W2, H2), jnp.float32)
    params2 = init_params(k_p2, C2)
    params2 = params2[:-1] + (jnp.array([0.5], jnp.float32),)

    out2, attn2 = jax.block_until_ready(self_attn_forward(x2, params2))
    out2_ref, attn2_ref = _reference_forward(x2, params2)
    assert jnp.allclose(out2, out2_ref, atol=1e-4, rtol=1e-4)
    assert jnp.allclose(attn2, attn2_ref, atol=2e-5, rtol=1e-4)

    # TODO(synk): offer a flash-style variant that never materializes the
    # (B, N, N) attention map for callers that only need `out` (the attention
    # writeback is the dominant HBM traffic term at large N, esp. v5e/v6e).
    print("KERNEL_OK")
</pallas_src>

<mosaic_0001>
module attributes {stable_mosaic.version = 11 : i64} {
  func.func @_kernel_folded(%arg0: i32, %arg1: i32, %arg2: memref<1x32x256xf32, #tpu.memory_space<vmem>>, %arg3: memref<1x32x256xf32, #tpu.memory_space<vmem>>, %arg4: memref<1x1x256xf32, #tpu.memory_space<vmem>>, %arg5: memref<32x32xf32, #tpu.memory_space<vmem>>, %arg6: memref<1xf32, #tpu.memory_space<smem>>, %arg7: memref<1x32x128xf32, #tpu.memory_space<vmem>>, %arg8: memref<1x128x256xf32, #tpu.memory_space<vmem>>) attributes {dimension_semantics = [#tpu.dimension_semantics<parallel>, #tpu.dimension_semantics<parallel>], iteration_bounds = array<i64: 2, 2>, scalar_prefetch = 0 : i64, scratch_operands = 0 : i64, tpu.core_type = #tpu.core_type<tc>, window_params = [{transform_indices = @transform_0, window_bounds = array<i64: 1, 32, 256>}, {transform_indices = @transform_1, window_bounds = array<i64: 1, 32, 256>}, {transform_indices = @transform_2, window_bounds = array<i64: 1, 1, 256>}, {pipeline_mode = #tpu.pipeline_mode<synchronous>, transform_indices = @transform_3, window_bounds = array<i64: 32, 32>}, {transform_indices = @transform_4, window_bounds = array<i64: 1>}, {transform_indices = @transform_5, window_bounds = array<i64: 1, 32, 128>}, {transform_indices = @transform_6, window_bounds = array<i64: 1, 128, 256>}]} {
    %c128_i32 = arith.constant 128 : i32
    %0 = arith.muli %arg1, %c128_i32 : i32
    %1 = tpu.assume_multiple %0, 128 : i32
    %c0 = arith.constant 0 : index
    %c0_0 = arith.constant 0 : index
    %2 = arith.index_cast %1 : i32 to index
    %3 = vector.load %arg2[%c0, %c0_0, %2] : memref<1x32x256xf32, #tpu.memory_space<vmem>>, vector<1x32x128xf32>
    %4 = vector.shape_cast %3 : vector<1x32x128xf32> to vector<32x128xf32>
    %c0_1 = arith.constant 0 : index
    %c0_2 = arith.constant 0 : index
    %c0_3 = arith.constant 0 : index
    %5 = vector.load %arg2[%c0_1, %c0_2, %c0_3] : memref<1x32x256xf32, #tpu.memory_space<vmem>>, vector<1x32x256xf32>
    %6 = vector.shape_cast %5 : vector<1x32x256xf32> to vector<32x256xf32>
    %c0_4 = arith.constant 0 : index
    %c0_5 = arith.constant 0 : index
    %c0_6 = arith.constant 0 : index
    %7 = vector.load %arg3[%c0_4, %c0_5, %c0_6] : memref<1x32x256xf32, #tpu.memory_space<vmem>>, vector<1x32x256xf32>
    %8 = vector.shape_cast %7 : vector<1x32x256xf32> to vector<32x256xf32>
    %c0_7 = arith.constant 0 : index
    %c0_8 = arith.constant 0 : index
    %c0_9 = arith.constant 0 : index
    %9 = vector.load %arg4[%c0_7, %c0_8, %c0_9] : memref<1x1x256xf32, #tpu.memory_space<vmem>>, vector<1x1x256xf32>
    %10 = vector.shape_cast %9 : vector<1x1x256xf32> to vector<1x256xf32>
    %c0_10 = arith.constant 0 : index
    %c0_11 = arith.constant 0 : index
    %11 = vector.load %arg5[%c0_10, %c0_11] : memref<32x32xf32, #tpu.memory_space<vmem>>, vector<32x32xf32>
    %c0_12 = arith.constant 0 : index
    %12 = memref.load %arg6[%c0_12] : memref<1xf32, #tpu.memory_space<smem>>
    %cst = arith.constant dense<0.000000e+00> : vector<128x32xf32>
    %13 = tpu.matmul %4, %11, %cst {dimension_numbers = #tpu.dot_dimension_numbers<[0], [0], [1], [1], [0, 1, 1, 1], [], []>} : vector<32x128xf32>, vector<32x32xf32>, vector<128x32xf32> -> vector<128x32xf32>
    %cst_13 = arith.constant dense<0.000000e+00> : vector<128x256xf32>
    %14 = tpu.matmul %13, %6, %cst_13 {dimension_numbers = #tpu.dot_dimension_numbers<[1], [0], [0], [1], [0, 0, 1, 1], [], []>} : vector<128x32xf32>, vector<32x256xf32>, vector<128x256xf32> -> vector<128x256xf32>
    %15 = vector.broadcast %10 : vector<1x256xf32> to vector<128x256xf32>
    %16 = arith.addf %14, %15 : vector<128x256xf32>
    %cst_14 = arith.constant dense<0xFF800000> : vector<128xf32>
    %17 = vector.multi_reduction <maximumf>, %16, %cst_14 [1] : vector<128x256xf32> to vector<128xf32>
    %18 = vector.shape_cast %17 : vector<128xf32> to vector<128x1xf32>
    %19 = vector.broadcast %18 : vector<128x1xf32> to vector<128x256xf32>
    %20 = arith.subf %16, %19 : vector<128x256xf32>
    %21 = math.exp %20 : vector<128x256xf32>
    %cst_15 = arith.constant dense<0.000000e+00> : vector<128xf32>
    %22 = vector.multi_reduction <add>, %21, %cst_15 [1] : vector<128x256xf32> to vector<128xf32>
    %23 = vector.shape_cast %22 : vector<128xf32> to vector<128x1xf32>
    %24 = tpu.reciprocal %23 : vector<128x1xf32> -> vector<128x1xf32>
    %25 = vector.broadcast %24 : vector<128x1xf32> to vector<128x256xf32>
    %26 = arith.mulf %21, %25 : vector<128x256xf32>
    %cst_16 = arith.constant dense<0.000000e+00> : vector<32x128xf32>
    %27 = tpu.matmul %8, %26, %cst_16 {dimension_numbers = #tpu.dot_dimension_numbers<[1], [1], [0], [0], [0, 0, 1, 0], [], []>} : vector<32x256xf32>, vector<128x256xf32>, vector<32x128xf32> -> vector<32x128xf32>
    %28 = vector.broadcast %12 : f32 to vector<32x128xf32>
    %29 = arith.mulf %28, %27 : vector<32x128xf32>
    %30 = arith.addf %29, %4 : vector<32x128xf32>
    %c0_17 = arith.constant 0 : index
    %c0_18 = arith.constant 0 : index
    %c0_19 = arith.constant 0 : index
    %31 = vector.load %arg7[%c0_17, %c0_18, %c0_19] : memref<1x32x128xf32, #tpu.memory_space<vmem>>, vector<1x32x128xf32>
    %32 = vector.shape_cast %31 : vector<1x32x128xf32> to vector<32x128xf32>
    %33 = vector.shape_cast %30 : vector<32x128xf32> to vector<1x32x128xf32>
    tpu.vector_store %arg7[%c0_17, %c0_18, %c0_19], %33 {strides = array<i32>} : memref<1x32x128xf32, #tpu.memory_space<vmem>>, vector<1x32x128xf32>,
    %c0_20 = arith.constant 0 : index
    %c0_21 = arith.constant 0 : index
    %c0_22 = arith.constant 0 : index
    %34 = vector.load %arg8[%c0_20, %c0_21, %c0_22] : memref<1x128x256xf32, #tpu.memory_space<vmem>>, vector<1x128x256xf32>
    %35 = vector.shape_cast %34 : vector<1x128x256xf32> to vector<128x256xf32>
    %36 = vector.shape_cast %26 : vector<128x256xf32> to vector<1x128x256xf32>
    tpu.vector_store %arg8[%c0_20, %c0_21, %c0_22], %36 {strides = array<i32>} : memref<1x128x256xf32, #tpu.memory_space<vmem>>, vector<1x128x256xf32>,
    return
  }
  func.func @transform_0(%arg0: i32, %arg1: i32) -> (i32, i32, i32) {
    %c0_i32 = arith.constant 0 : i32
    %c0_i32_0 = arith.constant 0 : i32
    %c0_i32_1 = arith.constant 0 : i32
    return %arg0, %c0_i32, %c0_i32_0 : i32, i32, i32
  }
  func.func @transform_1(%arg0: i32, %arg1: i32) -> (i32, i32, i32) {
    %c0_i32 = arith.constant 0 : i32
    %c0_i32_0 = arith.constant 0 : i32
    %c0_i32_1 = arith.constant 0 : i32
    return %arg0, %c0_i32, %c0_i32_0 : i32, i32, i32
  }
  func.func @transform_2(%arg0: i32, %arg1: i32) -> (i32, i32, i32) {
    %c0_i32 = arith.constant 0 : i32
    %c0_i32_0 = arith.constant 0 : i32
    %c0_i32_1 = arith.constant 0 : i32
    return %arg0, %c0_i32, %c0_i32_0 : i32, i32, i32
  }
  func.func @transform_3(%arg0: i32, %arg1: i32) -> (i32, i32) {
    %c0_i32 = arith.constant 0 : i32
    %c0_i32_0 = arith.constant 0 : i32
    %c0_i32_1 = arith.constant 0 : i32
    return %c0_i32, %c0_i32_0 : i32, i32
  }
  func.func @transform_4(%arg0: i32, %arg1: i32) -> i32 {
    %c0_i32 = arith.constant 0 : i32
    %c0_i32_0 = arith.constant 0 : i32
    return %c0_i32 : i32
  }
  func.func @transform_5(%arg0: i32, %arg1: i32) -> (i32, i32, i32) {
    %c0_i32 = arith.constant 0 : i32
    %c0_i32_0 = arith.constant 0 : i32
    return %arg0, %c0_i32, %arg1 : i32, i32, i32
  }
  func.func @transform_6(%arg0: i32, %arg1: i32) -> (i32, i32, i32) {
    %c0_i32 = arith.constant 0 : i32
    %c0_i32_0 = arith.constant 0 : i32
    return %arg0, %arg1, %c0_i32 : i32, i32, i32
  }
}

</mosaic_0001>

<bundles_post_ra>
// kernel: tpu_custom_call.1
= control target key start
LH: loop header
LB: loop body
LE: loop exit
PB: predicated region body
PF: predicated region fallthrough
CT: control target
= control target key end

     0   :  { %s2893_s0 = inlined_call_operand.hbm [shape: f32[2,32,256], index: 0, kind: input, shape index: {}]   ;;  %s2894_s1 = inlined_call_operand.hbm [shape: f32[2,32,256], index: 1, kind: input, shape index: {}]   ;;  %s2895_s2 = inlined_call_operand.vmem [shape: f32[2,1,256], index: 2, kind: input, shape index: {}]   ;;  %s2896_s3 = inlined_call_operand.hbm [shape: f32[32,32], index: 3, kind: input, shape index: {}]   ;;  %s2897_s4 = inlined_call_operand.<no memory space> [shape: f32[1], index: 4, kind: input, shape index: {}]   ;;  %s2898_s5 = inlined_call_operand.hbm [shape: f32[2,32,256], index: 5, kind: output, shape index: {0}]   ;;  %s2899_s6 = inlined_call_operand.hbm [shape: f32[2,256,256], index: 6, kind: output, shape index: {1}]  }
   0x1   :  { %2911 = sst [smem:[#allocation23_spill]] %s2893_s0 }
   0x2   :  { %2912 = sst [smem:[#allocation24_spill]] %s2896_s3 }
   0x3   :  { %2913 = sst [smem:[#allocation25_spill]] %s2898_s5 }
   0x4   :  { %2914 = sst [smem:[#allocation26_spill]] %s2899_s6 }
   0x5   :  { %12 = sst [smem:[#allocation2]] %s2897_s4 }
   0x6   :  { %13 = vsyncpa [#allocation4], 0 }
   0x7   :  { %15 = vsyncpa [#allocation4 + $0x1], 0 }
   0x8   :  { %16 = vsyncpa [#allocation7], 0 }
   0x9   :  { %18 = vsyncpa [#allocation7 + $0x1], 0 }
   0xa   :  { %19 = vsyncpa [#allocation5], 0 }
   0xb   :  { %21 = vsyncpa [#allocation5 + $0x1], 0 }
   0xc   :  { %22 = vsyncpa [#allocation11], 0 }
   0xd   :  { %24 = vsyncpa [#allocation11 + $0x1], 0  ;;  %s2140_s23 = smov 0   ;;  %s2142_s24 = smov 0  }
   0xe   :  { %s2144_s25 = smov 0   ;;  %s2146_s26 = smov 0  }
   0xf   :  { %s2148_s27 = smov 0   ;;  %s2150_s28 = smov 0  }
  0x10   :  { %s2152_s4 = smov 0   ;;  %s2154_s29 = smov 0  }
  0x11   :  { %s2156_s30 = smov 0   ;;  %s2158_s7 = smov 0  }
  0x12   :  { %s2160_s8 = smov 0  }
  0x13 LB: > { %2915 = sst [smem:[#allocation17_spill]] %s2046_s23  ;;  %s2194_s9 = sadd.s32 4294967295, %s2086_s8   ;;  %s2086_s8 = sphi %s2160_s8, %s30_s8   ;;  %s2082_s7 = sphi %s2158_s7, %s2954_s7   ;;  %s2078_s30 = sphi %s2156_s30, %s2953_s30   ;;  %s2074_s29 = sphi %s2154_s29, %s2952_s29   ;;  %s2070_s4 = sphi %s2152_s4, %s2943_s4   ;;  %s2066_s28 = sphi %s2150_s28, %s2951_s28   ;;  %s2062_s27 = sphi %s2148_s27, %s2950_s27   ;;  %s2058_s26 = sphi %s2146_s26, %s2949_s26   ;;  %s2054_s25 = sphi %s2144_s25, %s2948_s25   ;;  %s2050_s24 = sphi %s2142_s24, %s2947_s24   ;;  %s2046_s23 = sphi %s2140_s23, %s2946_s23  }
  0x14   : > { %2916 = sst [smem:[#allocation18_spill]] %s2078_s30  ;;  %s1424_s10 = sadd.s32 4294967294, %s2086_s8  }
  0x15   : > { %p62_p0 = scmp.ne.s32.totalorder %s2062_s27, %s2058_s26  ;;  %p2900_p1 = scmp.eq.s32.totalorder %s2194_s9, 0 }
  0x16   : > { %p181_p2 = scmp.ne.s32.totalorder %s2054_s25, %s2050_s24  ;;  %p182_p4 = scmp.eq.s32.totalorder %s2194_s9, 3 }
  0x17   : > { %p2204_p3 = por %p2900_p1, %p62_p0  ;;  %p187_p5 = scmp.ne.s32.totalorder %s2050_s24, %s2046_s23 }
  0x18   : > { %p188_p6 = scmp.eq.s32.totalorder %s1424_s10, 3  ;;  %p2211_p7 = por %p182_p4, %p181_p2 }
  0x19   : > { %s2917_s12 = scalar_select %p2204_p3, 1, 0 }
  0x1a   : > { %s2918_s13 = scalar_select %p2211_p7, 1, 0 }
  0x1b   : > { %p1425_p8 = scmp.ge.s32.totalorder %s2086_s8, 1  ;;  %p2216_p9 = por %p188_p6, %p187_p5 }
  0x1c   : > { %p223_p10 = scmp.lt.s32.totalorder %s2086_s8, 5  ;;  %s2088_s16 = smov [#allocation8]  }
  0x1d   : > { %s2919_s14 = scalar_select %p2216_p9, 1, 0 }
  0x1e   : > { %p2221_p11 = pnand %p1425_p8, %p223_p10  ;;  %s235_s17 = sshll.u32 %s2088_s16, 4  ;;  %s236_s17 = int_to_ptr.vmem [resolvable:$true] %s235_s17 }
  0x1f   : > { %2920 = sst [smem:[#allocation19_spill]] %s2919_s14 }
  0x20   : > { %s2921_s15 = scalar_select %p2221_p11, 1, 0 }
  0x21   : > { %p1616_p12 = pneg %p2221_p11  ;;  %s2923_s3 = sld [smem:[#allocation24_spill]] }
  0x23   : > { %p2229_p13 = pnand %p1616_p12, %p2900_p1 }
  0x25   : > { %p1838_p2 = pneg %p2229_p13 }
  0x27   : > { %s1836_s21 = scalar_lea.hbm %s2923_s3, 512 }
  0x28   : > { %p1837_p0 = scmp.ne.s32.totalorder %s2923_s3, %s1836_s21  ;;  %p1843_p6 = scmp.lt.u32.totalorder %s1836_s21, %s2923_s3 }
  0x2a   : > { %p1839_p4 = pnand %p1838_p2, %p1837_p0 }
  0x2c   : > { %p1840_p5 = pneg %p1839_p4 }
  0x2e   : > { %p1845_p8 = pnand %p1843_p6, %p1840_p5 }
  0x30   : > { %1848 = shalt.err (!%p1845_p8)
}
  0x31   : > { %s1849_s11 = scalar_lea.vmem %s236_s17, 512  ;;  %p1857_p9 = scmp.lt.s32.totalorder %s236_s17, %s236_s17 }
  0x32   : > { %p1850_p10 = scmp.ne.s32.totalorder %s236_s17, %s1849_s11  ;;  %p1858_p7 = scmp.lt.s32.totalorder %s1849_s11, %s1849_s11 }
  0x34   : > { %p1852_p12 = pnand %p1850_p10, %p1838_p2  ;;  %p1859_p3 = por %p1858_p7, %p1857_p9 }
  0x36   : > { %p1853_p1 = pneg %p1852_p12 }
  0x38   : > { %p1860_p11 = pnand %p1859_p3, %p1853_p1 }
  0x3a   : > { %1863 = shalt.err (!%p1860_p11)
}
  0x3b   : > { %s2089_s19 = smov 128   ;;  %s2090_s20 = smov 8  }
  0x3c   : > { %1619 = dma.hbm_to_vmem [thread:$0]  (!%p2229_p13), %s2923_s3, 512, %s236_s17, [#allocation7], %s2089_s19, %s2089_s19, %s2090_s20  }
  0x3d   : > { %s39_s11 = sadd.s32 1, %s2078_s30  ;;  %s42_s26 = sadd.s32 1, %s2082_s7 }
  0x3e   : > { %p40_p1 = scmp.ge.s32.totalorder %s39_s11, 2  ;;  %s49_s10 = sadd.s32 1, %s2066_s28 }
  0x3f   : > { %p56_p3 = scmp.ne.s32.totalorder %s2066_s28, %s2062_s27  ;;  %p57_p7 = scmp.eq.s32.totalorder %s2086_s8, 0 }
  0x40   : > { %s2956_s11 = smov (%p40_p1, %s39_s11), 0  ;;  %s2958_s26 = smov (!%p40_p1, %s42_s26), %s2082_s7 }
  0x41   : > { %2924 = sst [smem:[#allocation20_spill]] %s2956_s11  ;;  %s167_s18 = ssub.s32 %s2078_s30, %s2956_s11 }
  0x42   : > { %p44_p9 = scmp.ge.s32.totalorder %s2958_s26, 2  ;;  %p1635_p11 = scmp.lt.s32.totalorder %s2086_s8, 4 }
  0x43   : > { %p2261_p13 = por %p57_p7, %p56_p3  ;;  %s252_s16 = sand.u32 1, %s2066_s28  }
  0x44   : > { %s2960_s26 = smov (%p44_p9, %s2958_s26), 0  ;;  %s2268_s19 = sshll.u32 %s252_s16, 6 }
  0x45   : > { %2926 = sst [smem:[#allocation21_spill]] %s2960_s26  ;;  %s46_s20 = ssub.s32 %s2082_s7, %s2960_s26 }
  0x46   : > { %p47_p0 = scmp.eq.s32.totalorder %s46_s20, 0  ;;  %s168_s21 = sor.u32 %s167_s18, %s46_s20 }
  0x47   : > { %p169_p2 = scmp.eq.s32.totalorder %s168_s21, 0  ;;  %s1485_s22 = sshll.u32 %s2082_s7, 10 }
  0x48   : > { %s2274_s3 = scalar_select %p47_p0, %s2066_s28, %s49_s10  }
  0x49   : > { %s2928_s11 = sadd.s32 1, %s2054_s25  ;;  %s2929_s0 = sld [smem:[#allocation23_spill]] }
  0x4a   : > { %2927 = sst [smem:[#allocation22_spill]] %s2274_s3  ;;  %s256_s26 = scalar_lea.vmem [#allocation3], %s2268_s19 }
  0x4b   : > { %s2279_s30 = scalar_select %p169_p2, %s2054_s25, %s2928_s11  }
  0x4c   : > { %s263_s6 = sshll.u32 %s256_s26, 4  ;;  %p2295_p4 = pnand %p1635_p11, %p2261_p13  ;;  %s2289_s6 = int_to_ptr.vmem [resolvable:$true] %s263_s6 }
  0x4d   : > { %s2299_s11 = scalar_lea.sflag [#allocation4], %s252_s16 }
  0x4e   : > { %p1866_p6 = pneg %p2295_p4 }
  0x4f   : > { %s2286_s5 = scalar_lea.hbm %s2929_s0, %s1485_s22  ;;  %s1869_s18 = scalar_lea.hbm %s2929_s0, 2048 }
  0x50   : > { %s1864_s23 = scalar_lea.hbm %s2286_s5, 1024  ;;  %p1870_p12 = scmp.lt.u32.totalorder %s2286_s5, %s2929_s0 }
  0x51   : > { %p1865_p5 = scmp.ne.s32.totalorder %s2286_s5, %s1864_s23  ;;  %p1871_p1 = scmp.lt.u32.totalorder %s1869_s18, %s1864_s23 }
  0x52   : > { %p1873_p7 = scmp.lt.u32.totalorder %s1864_s23, %s2286_s5 }
  0x53   : > { %p1867_p8 = pnand %p1866_p6, %p1865_p5  ;;  %p1872_p3 = por %p1871_p1, %p1870_p12 }
  0x55   : > { %p1868_p10 = pneg %p1867_p8  ;;  %p1874_p9 = por %p1873_p7, %p1872_p3 }
  0x57   : > { %p1875_p11 = pnand %p1874_p9, %p1868_p10 }
  0x59   : > { %1878 = shalt.err (!%p1875_p11)
}
  0x5a   : > { %s1879_s16 = scalar_lea.vmem %s2289_s6, 1024  ;;  %s2091_s21 = smov [#allocation3]  }
  0x5b   : > { %p1880_p13 = scmp.ne.s32.totalorder %s2289_s6, %s1879_s16  ;;  %s1884_s14 = sshll.u32 %s2091_s21, 4  ;;  %s1885_s14 = int_to_ptr.vmem [resolvable:$false] %s1884_s14 }
  0x5c   : > { %s1886_s26 = scalar_lea.vmem %s1885_s14, 2048  ;;  %p1887_p5 = scmp.lt.s32.totalorder %s2289_s6, %s1885_s14 }
  0x5d   : > { %p1882_p0 = pnand %p1880_p13, %p1866_p6  ;;  %p1888_p8 = scmp.lt.s32.totalorder %s1886_s26, %s1879_s16 }
  0x5f   : > { %p1883_p2 = pneg %p1882_p0  ;;  %p1889_p12 = por %p1888_p8, %p1887_p5 }
  0x61   : > { %p1890_p1 = pnand %p1889_p12, %p1883_p2 }
  0x63   : > { %1893 = shalt.err (!%p1890_p1)
}
  0x64   : > { %s2092_s23 = smov 256   ;;  %s2093_s18 = smov 16  }
  0x65   : > { %1623 = dma.hbm_to_vmem [thread:$0]  (!%p2295_p4), %s2286_s5, 1024, %s2289_s6, %s2299_s11, %s2092_s23, %s2092_s23, %s2093_s18  }
  0x66   : > { %s2335_s16 = scalar_lea.hbm %s2894_s1, %s1485_s22  ;;  %s277_s21 = scalar_lea.vmem [#allocation6], %s2268_s19 }
  0x67   : > { %s284_s14 = sshll.u32 %s277_s21, 4  ;;  %s273_s26 = sand.u32 1, %s2086_s8   ;;  %s2338_s14 = int_to_ptr.vmem [resolvable:$true] %s284_s14 }
  0x68   : > { %s2341_s0 = scalar_lea.sflag [#allocation7], %s273_s26  ;;  %s1894_s3 = scalar_lea.hbm %s2335_s16, 1024 }
  0x69   : > { %p1895_p10 = scmp.ne.s32.totalorder %s2335_s16, %s1894_s3  ;;  %s1899_s22 = scalar_lea.hbm %s2894_s1, 2048 }
  0x6a   : > { %p1900_p9 = scmp.lt.u32.totalorder %s2335_s16, %s2894_s1  ;;  %p1901_p11 = scmp.lt.u32.totalorder %s1899_s22, %s1894_s3 }
  0x6b   : > { %p1897_p3 = pnand %p1895_p10, %p1866_p6  ;;  %p1903_p0 = scmp.lt.u32.totalorder %s1894_s3, %s2335_s16 }
  0x6c   : > { %p1902_p13 = por %p1901_p11, %p1900_p9 }
  0x6d   : > { %p1898_p7 = pneg %p1897_p3 }
  0x6e   : > { %p1904_p2 = por %p1903_p0, %p1902_p13 }
  0x70   : > { %p1905_p5 = pnand %p1904_p2, %p1898_p7 }
  0x72   : > { %1908 = shalt.err (!%p1905_p5)
}
  0x73   : > { %s1909_s19 = scalar_lea.vmem %s2338_s14, 1024  ;;  %s2094_s20 = smov [#allocation6]  }
  0x74   : > { %p1910_p8 = scmp.ne.s32.totalorder %s2338_s14, %s1909_s19  ;;  %s1914_s21 = sshll.u32 %s2094_s20, 4  ;;  %s1915_s21 = int_to_ptr.vmem [resolvable:$false] %s1914_s21 }
  0x75   : > { %s1916_s26 = scalar_lea.vmem %s1915_s21, 2048  ;;  %p1917_p10 = scmp.lt.s32.totalorder %s2338_s14, %s1915_s21 }
  0x76   : > { %p1912_p12 = pnand %p1910_p8, %p1866_p6  ;;  %p1918_p3 = scmp.lt.s32.totalorder %s1916_s26, %s1909_s19 }
  0x78   : > { %p1913_p1 = pneg %p1912_p12  ;;  %p1919_p9 = por %p1918_p3, %p1917_p10 }
  0x7a   : > { %p1920_p11 = pnand %p1919_p9, %p1913_p1 }
  0x7c   : > { %1923 = shalt.err (!%p1920_p11)
}
  0x7d   : > { %1626 = dma.hbm_to_vmem [thread:$0]  (!%p2295_p4), %s2335_s16, 1024, %s2338_s14, %s2341_s0, %s2092_s23, %s2092_s23, %s2093_s18  }
  0x7e   : > { %p2931_p6 = scmp.ne.s32.totalorder %s2921_s15, 0 }
  0x7f   : > { %s305_s3 = sand.u32 (!%p2931_p6), 1, %s2062_s27   ;;  %p2932_p7 = scmp.ne.s32.totalorder (!%p2931_p6), %s2917_s12, 0 }
  0x80   : > { %303 = sbr.rel (%p2931_p6) target bundleno = 1330 (0x532), region = 40  ;;  %s1435_s5 = sshll.u32 (!%p2931_p6), %s305_s3, 6 }
  0x81   : > { %s306_s6 = scalar_lea.sflag (!%p2931_p6), [#allocation4], %s305_s3  ;;  %s2373_s22 = scalar_lea.vmem (!%p2931_p6), [#allocation3], %s1435_s5 }
  0x87   : > { %2025 = dma.done.wait (%p2932_p7), %s306_s6, 1024  }
  0x88   : > { %2027 = vsyncadd (%p2932_p7), %s306_s6, 4294966272  ;;  %s314_s10 = sand.u32 1, %s2194_s9   ;;  %s2380_s0 = scalar_lea.vmem [#allocation6], %s1435_s5 }
  0x89   : > { %s315_s11 = scalar_lea.sflag [#allocation7], %s314_s10 }
  0x8a   : > { %2029 = dma.done.wait (%p2932_p7), %s315_s11, 1024  }
  0x8b   : > { %2031 = vsyncadd (%p2932_p7), %s315_s11, 4294966272  ;;  %p2933_p4 = scmp.eq.s32.totalorder %s2194_s9, 0 }
  0x8d   : > { %2033 = dma.done.wait (%p2933_p4), [#allocation7], 512   ;;  %p2934_p13 = pmov %p2933_p4 }
  0x8e   : > { %s1441_s15 = sshll.u32 %s2070_s4, 7  ;;  %v396_v1 = vld [vmem:[#allocation8] sm:$0xff]  ;;  %v397_v2 = vld [vmem:[#allocation8 + $0x8] sm:$0xff]  ;;  %v398_v5 = vld [vmem:[#allocation8 + $0x10] sm:$0xff]  ;;  %vm433_vm0 = vcmask 261120   ;;  %v2095_v38 = vmov 0.0   ;;  %v628_v55 = vlaneseq }
  0x8f   : > { %2035 = vsyncadd (%p2934_p13), [#allocation7], 4294966784  ;;  %s371_s23 = sshra.s32 %s1441_s15, 7  ;;  %v1540_v4 = vpack.c.bf16 %v397_v2, %v396_v1  ;;  %v399_v6 = vld [vmem:[#allocation8 + $0x18] sm:$0xff]  ;;  %v380_v10 = vld [vmem:[%s2373_s22 + $0x8] sm:$0xff]  ;;  %750 = vmatprep.mubr.f32.mxu1 %v2095_v38  ;;  %p365_p0 = scmp.lt.s32.totalorder %s2074_s29, 1 }
  0x90   : > { %s1442_s18 = sshll.u32 %s371_s23, 3  ;;  %v1544_v7 = vpack.c.bf16 %v399_v6, %v398_v5  ;;  %v382_v11 = vld [vmem:[%s2373_s22 + $0x18] sm:$0xff]  ;;  %v379_v12 = vld [vmem:[%s2373_s22] sm:$0xff]  ;;  %v381_v14 = vld [vmem:[%s2373_s22 + $0x10] sm:$0xff]  ;;  %v629_v56 = vshrl.u32 %v628_v55, 7  ;;  %s2706_s20 = sand.u32 1, %s2050_s24  }
  0x91   : > { %s2392_s16 = scalar_lea.vmem %s2373_s22, %s1442_s18 [#allocation3]  ;;  %1541 = vmatprep.subr.bf16.mxu0 %v1540_v4  ;;  %v1548_v13 = vpack.c.bf16 %v382_v11, %v380_v10  ;;  %v384_v15 = vld [vmem:[%s2373_s22 + $0x28] sm:$0xff]  ;;  %v386_v16 = vld [vmem:[%s2373_s22 + $0x38] sm:$0xff]  ;;  %v1550_v17 = vpack.c.bf16 %v381_v14, %v379_v12  ;;  %v383_v19 = vld [vmem:[%s2373_s22 + $0x20] sm:$0xff]  ;;  %s1439_s21 = sshll.u32 %s2706_s20, 8 }
  0x92   : > { %v375_v0 = vld [vmem:[%s2392_s16] sm:$0xff]  ;;  %v376_v3 = vld [vmem:[%s2392_s16 + $0x10] sm:$0xff]  ;;  %1543 = vmatpush3.bf16.msra.mxu0 %v1540_v4  ;;  %v1552_v18 = vpack.c.bf16 %v386_v16, %v384_v15  ;;  %s366_s9 = scalar_select %p365_p0, %s2074_s29, 1  ;;  %v630_v57 = vsub.s32 0, %v629_v56  ;;  %v634_v59 = vsub.s32 1, %v629_v56 }
  0x93   : > { %401 = vxpose.xlu0.b32.start [1/4] (short) %v375_v0, 128  ;;  %v377_v8 = vld [vmem:[%s2392_s16 + $0x20] sm:$0xff]  ;;  %1545 = vmatprep.subr.bf16.mxu0 %v1544_v7  ;;  %v378_v9 = vld [vmem:[%s2392_s16 + $0x30] sm:$0xff]  ;;  %s2711_s26 = scalar_lea.vmem [#allocation10], %s1439_s21  ;;  %s1487_s3 = sshll.u32 %s2070_s4, 5 }
  0x94   : > { %v385_v20 = vld [vmem:[%s2373_s22 + $0x30] sm:$0xff]  ;;  %1549 = vmatprep.subr.bf16.mxu1 %v1548_v13  ;;  %s1440_s12 = sshll.u32 %s366_s9, 1  ;;  %s1481_s5 = sshll.u32 %s2074_s29, 6 }
  0x95   : > { %1551 = vmatpush1.bf16.msra.mxu1 %v1550_v17  ;;  %v1554_v21 = vpack.c.bf16 %v385_v20, %v383_v19  ;;  %s368_s19 = scalar_lea.vmem %s2895_s2, %s1440_s12  ;;  %s1256_s6 = sshll.u32 %s2711_s26, 4  ;;  %s2784_s6 = int_to_ptr.vmem [resolvable:$true] %s1256_s6 }
  0x96   : > { %1547 = vmatpush3.bf16.msra.mxu0 %v1544_v7  ;;  %1553 = vmatprep.subr.bf16.mxu1 %v1552_v18  ;;  %v395_v58 = vld [vmem:[%s368_s19] sm:$0x3]  ;;  %s1253_s22 = sadd.s32 %s1487_s3, %s1481_s5  ;;  %s2935_s23 = sld [smem:[#allocation26_spill]] }
  0x97   : > { %402 = vxpose.xlu0.b32.cont [2/4] (short) %v376_v3, 128  ;;  %v2443_v60 = vrot.slane %v395_v58, %v630_v57  ;;  %v2445_v61 = vrot.slane %v395_v58, %v634_v59  ;;  %s1482_s10 = sshll.u32 %s1253_s22, 7  ;;  %s1223_s12 = scalar_lea.sflag [#allocation11], %s2706_s20 }
  0x98   : > { %s1924_s14 = scalar_lea.vmem %s2784_s6, 4096  ;;  %p2937_p5 = scmp.ne.s32.totalorder %s2918_s13, 0 }
  0x99   : > { %1555 = vmatpush1.bf16.msra.mxu1 %v1554_v21  ;;  %p1925_p2 = scmp.ne.s32.totalorder %s2784_s6, %s1924_s14 }
  0x9b   : > { %403 = vxpose.xlu0.b32.cont [3/4] (short) %v377_v8, 128  ;;  %p1926_p8 = pnand %p1925_p2, %p2937_p5 }
  0x9c   : > { %s2936_s18 = smov %s2935_s23  ;;  %s2789_s9 = scalar_lea.hbm %s2935_s23, %s1482_s10 }
  0x9d   : > { %p1927_p12 = pneg %p1926_p8 }
  0x9f   : > { %404 = vxpose.xlu0.b32.end [4/4] (short) %v378_v9, 128 }
 0x113   : > { %v417_v22 = vpop.trf.xlu0 }
 0x114   : > { %1516 = vmatprep.mubr.msk.f32.mxu0 %vm433_vm0, %v417_v22 }
 0x117   : > { %v418_v23 = vpop.trf.xlu0 }
 0x118   : > { %1517 = vmatmul.mubr.msk.f32.vlgmr.msra.gmra.mrb[0].mxu0 %vm433_vm0, %v418_v23 }
 0x11b   : > { %v419_v24 = vpop.trf.xlu0 }
 0x11c   : > { %1519 = vmatprep.mubr.msk.f32.mxu0 %vm433_vm0, %v419_v24 }
 0x11f   : > { %v420_v25 = vpop.trf.xlu0 }
 0x120   : > { %1520 = vmatmul.mubr.msk.f32.gmra.mrb[2].mxu0 %vm433_vm0, %v420_v25 }
 0x123   : > { %v421_v26 = vpop.trf.xlu0 }
 0x124   : > { %1522 = vmatprep.mubr.msk.f32.mxu0 %vm433_vm0, %v421_v26 }
 0x127   : > { %v422_v27 = vpop.trf.xlu0 }
 0x128   : > { %1523 = vmatmul.mubr.msk.f32.gmra.mrb[4].mxu0 %vm433_vm0, %v422_v27 }
 0x12b   : > { %v423_v28 = vpop.trf.xlu0 }
 0x12c   : > { %1525 = vmatprep.mubr.msk.f32.mxu0 %vm433_vm0, %v423_v28 }
 0x12f   : > { %v424_v29 = vpop.trf.xlu0 }
 0x130   : > { %1526 = vmatmul.mubr.msk.f32.gmra.mrb[6].mxu0 %vm433_vm0, %v424_v29 }
 0x133   : > { %v425_v30 = vpop.trf.xlu0 }
 0x134   : > { %1528 = vmatprep.mubr.msk.f32.mxu0 %vm433_vm0, %v425_v30 }
 0x137   : > { %v426_v31 = vpop.trf.xlu0 }
 0x138   : > { %1529 = vmatmul.mubr.msk.f32.gmra.mrb[8].mxu0 %vm433_vm0, %v426_v31 }
 0x13b   : > { %v427_v32 = vpop.trf.xlu0 }
 0x13c   : > { %1531 = vmatprep.mubr.msk.f32.mxu0 %vm433_vm0, %v427_v32 }
 0x13f   : > { %v428_v33 = vpop.trf.xlu0 }
 0x140   : > { %1532 = vmatmul.mubr.msk.f32.gmra.mrb[10].mxu0 %vm433_vm0, %v428_v33 }
 0x143   : > { %v429_v34 = vpop.trf.xlu0 }
 0x144   : > { %1534 = vmatprep.mubr.msk.f32.mxu0 %vm433_vm0, %v429_v34 }
 0x147   : > { %v430_v35 = vpop.trf.xlu0 }
 0x148   : > { %1535 = vmatmul.mubr.msk.f32.gmra.mrb[12].mxu0 %vm433_vm0, %v430_v35 }
 0x14b   : > { %v431_v36 = vpop.trf.xlu0 }
 0x14c   : > { %1537 = vmatprep.mubr.msk.f32.mxu0 %vm433_vm0, %v431_v36 }
 0x14f   : > { %v432_v37 = vpop.trf.xlu0 }
 0x150   : > { %1538 = vmatmul.mubr.msk.f32.gmra.mrb[14].mxu0 %vm433_vm0, %v432_v37 }
 0x1eb   : > { %v1518_v39 = vpop.f32.mrb[0].mxu0 }
 0x1ec   : > { %v548_v40 = vpop.f32.mrb[1].mxu0 }
 0x1ed   : > { %1459 = vmatmul.mubr.msk.f32.vlgmr.msra.gmra.mrb[0].mxu1 %vm433_vm0, %v548_v40 }
 0x1ee   : > { %756 = vmatprep.mubr.f32.mxu1 %v2095_v38 }
 0x1f1   : > { %1460 = vmatmul.mubr.msk.f32.gmra.mrb[2].mxu1 %vm433_vm0, %v1518_v39 }
 0x1f2   : > { %762 = vmatprep.mubr.f32.mxu1 %v2095_v38 }
 0x1f3   : > { %v1521_v41 = vpop.f32.mrb[2].mxu0 }
 0x1f4   : > { %v558_v42 = vpop.f32.mrb[3].mxu0 }
 0x1f5   : > { %1461 = vmatmul.mubr.msk.f32.gmra.mrb[4].mxu1 %vm433_vm0, %v558_v42 }
 0x1f6   : > { %768 = vmatprep.mubr.f32.mxu1 %v2095_v38 }
 0x1f9   : > { %1462 = vmatmul.mubr.msk.f32.gmra.mrb[6].mxu1 %vm433_vm0, %v1521_v41 }
 0x1fa   : > { %774 = vmatprep.mubr.f32.mxu1 %v2095_v38 }
 0x1fb   : > { %v1524_v43 = vpop.f32.mrb[4].mxu0 }
 0x1fc   : > { %v568_v44 = vpop.f32.mrb[5].mxu0 }
 0x1fd   : > { %1463 = vmatmul.mubr.msk.f32.gmra.mrb[8].mxu1 %vm433_vm0, %v568_v44 }
 0x1fe   : > { %780 = vmatprep.mubr.f32.mxu1 %v2095_v38 }
 0x201   : > { %1464 = vmatmul.mubr.msk.f32.gmra.mrb[10].mxu1 %vm433_vm0, %v1524_v43 }
 0x202   : > { %786 = vmatprep.mubr.f32.mxu1 %v2095_v38 }
 0x203   : > { %v1527_v45 = vpop.f32.mrb[6].mxu0 }
 0x204   : > { %v578_v46 = vpop.f32.mrb[7].mxu0 }
 0x205   : > { %1465 = vmatmul.mubr.msk.f32.gmra.mrb[12].mxu1 %vm433_vm0, %v578_v46 }
 0x206   : > { %792 = vmatprep.mubr.f32.mxu1 %v2095_v38 }
 0x209   : > { %1466 = vmatmul.mubr.msk.f32.gmra.mrb[14].mxu1 %vm433_vm0, %v1527_v45 }
 0x20a   : > { %798 = vmatprep.mubr.f32.mxu1 %v2095_v38 }
 0x20b   : > { %v1530_v47 = vpop.f32.mrb[8].mxu0 }
 0x20c   : > { %v588_v48 = vpop.f32.mrb[9].mxu0 }
 0x20d   : > { %1467 = vmatmul.mubr.msk.f32.gmra.mrb[16].mxu1 %vm433_vm0, %v588_v48 }
 0x20e   : > { %804 = vmatprep.mubr.f32.mxu1 %v2095_v38 }
 0x211   : > { %1468 = vmatmul.mubr.msk.f32.gmra.mrb[18].mxu1 %vm433_vm0, %v1530_v47 }
 0x212   : > { %810 = vmatprep.mubr.f32.mxu1 %v2095_v38 }
 0x213   : > { %v1533_v49 = vpop.f32.mrb[10].mxu0 }
 0x214   : > { %v598_v50 = vpop.f32.mrb[11].mxu0 }
 0x215   : > { %1469 = vmatmul.mubr.msk.f32.gmra.mrb[20].mxu1 %vm433_vm0, %v598_v50 }
 0x216   : > { %816 = vmatprep.mubr.f32.mxu1 %v2095_v38 }
 0x219   : > { %1470 = vmatmul.mubr.msk.f32.gmra.mrb[22].mxu1 %vm433_vm0, %v1533_v49 }
 0x21a   : > { %822 = vmatprep.mubr.f32.mxu1 %v2095_v38 }
 0x21b   : > { %v1536_v51 = vpop.f32.mrb[12].mxu0 }
 0x21c   : > { %v608_v52 = vpop.f32.mrb[13].mxu0 }
 0x21d   : > { %1471 = vmatmul.mubr.msk.f32.gmra.mrb[24].mxu1 %vm433_vm0, %v608_v52 }
 0x21e   : > { %828 = vmatprep.mubr.f32.mxu1 %v2095_v38 }
 0x221   : > { %1472 = vmatmul.mubr.msk.f32.gmra.mrb[26].mxu1 %vm433_vm0, %v1536_v51 }
 0x222   : > { %834 = vmatprep.mubr.f32.mxu1 %v2095_v38 }
 0x223   : > { %v1539_v53 = vpop.f32.mrb[14].mxu0 }
 0x224   : > { %v618_v54 = vpop.f32.mrb[15].mxu0 }
 0x225   : > { %1473 = vmatmul.mubr.msk.f32.gmra.mrb[28].mxu1 %vm433_vm0, %v618_v54 }
 0x226   : > { %840 = vmatprep.mubr.f32.mxu1 %v2095_v38 }
 0x229   : > { %1474 = vmatmul.mubr.msk.f32.gmra.mrb[30].mxu1 %vm433_vm0, %v1539_v53 }
 0x2c0   : > { %v752_v62 = vpop.f32.mrb[0].mxu1 }
 0x2c1   : > { %v2448_v63 = vadd.f32 %v752_v62, %v2443_v60  ;;  %v754_v0 = vpop.f32.mrb[1].mxu1 }
 0x2c2   : > { %v2451_v1 = vadd.f32 %v754_v0, %v2445_v61 }
 0x2c4   : > { %v758_v2 = vpop.f32.mrb[2].mxu1  ;;  %v847_v3 = vmax.f32 %v2448_v63, %v2451_v1 }
 0x2c5   : > { %v2456_v4 = vadd.f32 %v758_v2, %v2443_v60  ;;  %v760_v5 = vpop.f32.mrb[3].mxu1 }
 0x2c6   : > { %v2459_v6 = vadd.f32 %v760_v5, %v2445_v61  ;;  %848 = vmax.xlane.f32.xlu1 %v847_v3 }
 0x2c8   : > { %v764_v7 = vpop.f32.mrb[4].mxu1  ;;  %v850_v8 = vmax.f32 %v2456_v4, %v2459_v6 }
 0x2c9   : > { %v2464_v9 = vadd.f32 %v764_v7, %v2443_v60  ;;  %v766_v10 = vpop.f32.mrb[5].mxu1 }
 0x2ca   : > { %v2467_v11 = vadd.f32 %v766_v10, %v2445_v61  ;;  %851 = vmax.xlane.f32.xlu1 %v850_v8 }
 0x2cc   : > { %v770_v12 = vpop.f32.mrb[6].mxu1  ;;  %v853_v13 = vmax.f32 %v2464_v9, %v2467_v11 }
 0x2cd   : > { %v2472_v14 = vadd.f32 %v770_v12, %v2443_v60  ;;  %v772_v15 = vpop.f32.mrb[7].mxu1 }
 0x2ce   : > { %v2475_v16 = vadd.f32 %v772_v15, %v2445_v61  ;;  %854 = vmax.xlane.f32.xlu1 %v853_v13 }
 0x2d0   : > { %v776_v17 = vpop.f32.mrb[8].mxu1  ;;  %v856_v18 = vmax.f32 %v2472_v14, %v2475_v16 }
 0x2d1   : > { %v2480_v19 = vadd.f32 %v776_v17, %v2443_v60  ;;  %v778_v20 = vpop.f32.mrb[9].mxu1 }
 0x2d2   : > { %v2483_v21 = vadd.f32 %v778_v20, %v2445_v61  ;;  %857 = vmax.xlane.f32.xlu1 %v856_v18 }
 0x2d4   : > { %v782_v22 = vpop.f32.mrb[10].mxu1  ;;  %v859_v23 = vmax.f32 %v2480_v19, %v2483_v21 }
 0x2d5   : > { %v2488_v24 = vadd.f32 %v782_v22, %v2443_v60  ;;  %v784_v25 = vpop.f32.mrb[11].mxu1 }
 0x2d6   : > { %v2491_v26 = vadd.f32 %v784_v25, %v2445_v61  ;;  %860 = vmax.xlane.f32.xlu0 %v859_v23 }
 0x2d8   : > { %v788_v27 = vpop.f32.mrb[12].mxu1  ;;  %v862_v28 = vmax.f32 %v2488_v24, %v2491_v26 }
 0x2d9   : > { %v2496_v29 = vadd.f32 %v788_v27, %v2443_v60  ;;  %v790_v30 = vpop.f32.mrb[13].mxu1 }
 0x2da   : > { %v2499_v31 = vadd.f32 %v790_v30, %v2445_v61  ;;  %863 = vmax.xlane.f32.xlu1 %v862_v28 }
 0x2dc   : > { %v794_v32 = vpop.f32.mrb[14].mxu1  ;;  %v865_v33 = vmax.f32 %v2496_v29, %v2499_v31 }
 0x2dd   : > { %v2504_v34 = vadd.f32 %v794_v32, %v2443_v60  ;;  %v796_v35 = vpop.f32.mrb[15].mxu1 }
 0x2de   : > { %v2507_v36 = vadd.f32 %v796_v35, %v2445_v61  ;;  %866 = vmax.xlane.f32.xlu1 %v865_v33 }
 0x2e0   : > { %v800_v37 = vpop.f32.mrb[16].mxu1  ;;  %v868_v38 = vmax.f32 %v2504_v34, %v2507_v36 }
 0x2e1   : > { %v2512_v39 = vadd.f32 %v800_v37, %v2443_v60  ;;  %v802_v40 = vpop.f32.mrb[17].mxu1 }
 0x2e2   : > { %v2515_v41 = vadd.f32 %v802_v40, %v2445_v61  ;;  %869 = vmax.xlane.f32.xlu1 %v868_v38 }
 0x2e4   : > { %v806_v42 = vpop.f32.mrb[18].mxu1  ;;  %v871_v43 = vmax.f32 %v2512_v39, %v2515_v41 }
 0x2e5   : > { %v2520_v44 = vadd.f32 %v806_v42, %v2443_v60  ;;  %v808_v45 = vpop.f32.mrb[19].mxu1 }
 0x2e6   : > { %v2523_v46 = vadd.f32 %v808_v45, %v2445_v61  ;;  %872 = vmax.xlane.f32.xlu1 %v871_v43 }
 0x2e8   : > { %v812_v47 = vpop.f32.mrb[20].mxu1  ;;  %v874_v48 = vmax.f32 %v2520_v44, %v2523_v46 }
 0x2e9   : > { %v2528_v49 = vadd.f32 %v812_v47, %v2443_v60  ;;  %v814_v50 = vpop.f32.mrb[21].mxu1 }
 0x2ea   : > { %v2531_v51 = vadd.f32 %v814_v50, %v2445_v61  ;;  %875 = vmax.xlane.f32.xlu1 %v874_v48 }
 0x2ec   : > { %v818_v52 = vpop.f32.mrb[22].mxu1  ;;  %v877_v53 = vmax.f32 %v2528_v49, %v2531_v51 }
 0x2ed   : > { %v2536_v54 = vadd.f32 %v818_v52, %v2443_v60  ;;  %v820_v55 = vpop.f32.mrb[23].mxu1 }
 0x2ee   : > { %v2539_v56 = vadd.f32 %v820_v55, %v2445_v61  ;;  %878 = vmax.xlane.f32.xlu1 %v877_v53 }
 0x2f0   : > { %v824_v57 = vpop.f32.mrb[24].mxu1  ;;  %v880_v58 = vmax.f32 %v2536_v54, %v2539_v56 }
 0x2f1   : > { %v2544_v59 = vadd.f32 %v824_v57, %v2443_v60  ;;  %v826_v62 = vpop.f32.mrb[25].mxu1 }
 0x2f2   : > { %v2547_v0 = vadd.f32 %v826_v62, %v2445_v61  ;;  %881 = vmax.xlane.f32.xlu1 %v880_v58 }
 0x2f4   : > { %v830_v2 = vpop.f32.mrb[26].mxu1  ;;  %v883_v3 = vmax.f32 %v2544_v59, %v2547_v0 }
 0x2f5   : > { %v2552_v5 = vadd.f32 %v830_v2, %v2443_v60  ;;  %v832_v7 = vpop.f32.mrb[27].mxu1 }
 0x2f6   : > { %v2555_v8 = vadd.f32 %v832_v7, %v2445_v61  ;;  %884 = vmax.xlane.f32.xlu1 %v883_v3 }
 0x2f8   : > { %v836_v10 = vpop.f32.mrb[28].mxu1  ;;  %v886_v12 = vmax.f32 %v2552_v5, %v2555_v8 }
 0x2f9   : > { %v2560_v13 = vadd.f32 %v836_v10, %v2443_v60  ;;  %v838_v15 = vpop.f32.mrb[29].mxu1 }
 0x2fa   : > { %v2563_v17 = vadd.f32 %v838_v15, %v2445_v61  ;;  %887 = vmax.xlane.f32.xlu1 %v886_v12 }
 0x2fc   : > { %v842_v18 = vpop.f32.mrb[30].mxu1  ;;  %v889_v20 = vmax.f32 %v2560_v13, %v2563_v17 }
 0x2fd   : > { %v2568_v22 = vadd.f32 %v842_v18, %v2443_v60  ;;  %v844_v23 = vpop.f32.mrb[31].mxu1 }
 0x2fe   : > { %v2571_v25 = vadd.f32 %v844_v23, %v2445_v61  ;;  %890 = vmax.xlane.f32.xlu1 %v889_v20 }
 0x300   : > { %v892_v27 = vmax.f32 %v2568_v22, %v2571_v25 }
 0x302   : > { %893 = vmax.xlane.f32.xlu1 %v892_v27 }
 0x353   : > { %v849_v28 = vpop.xlane.xlu1 %848 }
 0x354   : > { %v895_v30 = vsub.f32 %v2448_v63, %v849_v28  ;;  %v896_v32 = vsub.f32 %v2451_v1, %v849_v28 }
 0x356   : > { %v927_v33 = vmul.f32 1.442695, %v895_v30  ;;  %v929_v35 = vmul.f32 1.442695, %v896_v32 }
 0x357   : > { %v852_v37 = vpop.xlane.xlu1 %851 }
 0x358   : > { %1736 = vpow2.f32 %v927_v33  ;;  %v897_v60 = vsub.f32 %v2456_v4, %v852_v37  ;;  %v898_v38 = vsub.f32 %v2459_v6, %v852_v37 }
 0x359   : > { %1738 = vpow2.f32 %v929_v35 }
 0x35a   : > { %v931_v61 = vmul.f32 1.442695, %v897_v60  ;;  %v933_v40 = vmul.f32 1.442695, %v898_v38 }
 0x35b   : > { %v855_v42 = vpop.xlane.xlu1 %854 }
 0x35c   : > { %1740 = vpow2.f32 %v931_v61  ;;  %v899_v43 = vsub.f32 %v2464_v9, %v855_v42  ;;  %v900_v45 = vsub.f32 %v2467_v11, %v855_v42 }
 0x35d   : > { %1742 = vpow2.f32 %v933_v40 }
 0x35e   : > { %v935_v63 = vmul.f32 1.442695, %v899_v43  ;;  %v937_v1 = vmul.f32 1.442695, %v900_v45 }
 0x35f   : > { %v858_v47 = vpop.xlane.xlu1 %857 }
 0x360   : > { %1744 = vpow2.f32 %v935_v63  ;;  %v901_v48 = vsub.f32 %v2472_v14, %v858_v47  ;;  %v902_v4 = vsub.f32 %v2475_v16, %v858_v47 }
 0x361   : > { %1746 = vpow2.f32 %v937_v1 }
 0x362   : > { %v2583_v6 = vpop.eup %1736  ;;  %v939_v50 = vmul.f32 1.442695, %v901_v48  ;;  %v941_v52 = vmul.f32 1.442695, %v902_v4 }
 0x363   : > { %v2585_v53 = vpop.eup %1738  ;;  %v861_v55 = vpop.xlane.xlu0 %860 }
 0x364   : > { %1748 = vpow2.f32 %v939_v50  ;;  %v903_v9 = vsub.f32 %v2480_v19, %v861_v55  ;;  %v904_v11 = vsub.f32 %v2483_v21, %v861_v55  ;;  %v991_v57 = vadd.f32 %v2585_v53, %v2583_v6 }
 0x365   : > { %1750 = vpow2.f32 %v941_v52 }
 0x366   : > { %v2591_v14 = vpop.eup %1740  ;;  %v943_v16 = vmul.f32 1.442695, %v903_v9  ;;  %v945_v58 = vmul.f32 1.442695, %v904_v11  ;;  %992 = vadd.xlane.f32.xlu1 %v991_v57 }
 0x367   : > { %v2593_v62 = vpop.eup %1742  ;;  %v864_v2 = vpop.xlane.xlu1 %863 }
 0x368   : > { %1752 = vpow2.f32 %v943_v16  ;;  %v905_v3 = vsub.f32 %v2488_v24, %v864_v2  ;;  %v906_v7 = vsub.f32 %v2491_v26, %v864_v2  ;;  %v994_v19 = vadd.f32 %v2593_v62, %v2591_v14 }
 0x369   : > { %1754 = vpow2.f32 %v945_v58 }
 0x36a   : > { %v2599_v21 = vpop.eup %1744  ;;  %v947_v10 = vmul.f32 1.442695, %v905_v3  ;;  %v949_v12 = vmul.f32 1.442695, %v906_v7  ;;  %995 = vadd.xlane.f32.xlu1 %v994_v19 }
 0x36b   : > { %v2601_v15 = vpop.eup %1746  ;;  %v867_v18 = vpop.xlane.xlu1 %866 }
 0x36c   : > { %1756 = vpow2.f32 %v947_v10  ;;  %v907_v20 = vsub.f32 %v2496_v29, %v867_v18  ;;  %v908_v23 = vsub.f32 %v2499_v31, %v867_v18  ;;  %v997_v24 = vadd.f32 %v2601_v15, %v2599_v21 }
 0x36d   : > { %1758 = vpow2.f32 %v949_v12 }
 0x36e   : > { %v2607_v26 = vpop.eup %1748  ;;  %v951_v27 = vmul.f32 1.442695, %v907_v20  ;;  %v953_v28 = vmul.f32 1.442695, %v908_v23  ;;  %998 = vadd.xlane.f32.xlu1 %v997_v24 }
 0x36f   : > { %v2609_v30 = vpop.eup %1750  ;;  %v870_v32 = vpop.xlane.xlu1 %869 }
 0x370   : > { %1760 = vpow2.f32 %v951_v27  ;;  %v909_v33 = vsub.f32 %v2504_v34, %v870_v32  ;;  %v910_v35 = vsub.f32 %v2507_v36, %v870_v32  ;;  %v1000_v29 = vadd.f32 %v2609_v30, %v2607_v26 }
 0x371   : > { %1762 = vpow2.f32 %v953_v28 }
 0x372   : > { %v2615_v31 = vpop.eup %1752  ;;  %v955_v37 = vmul.f32 1.442695, %v909_v33  ;;  %v957_v60 = vmul.f32 1.442695, %v910_v35  ;;  %1001 = vadd.xlane.f32.xlu1 %v1000_v29 }
 0x373   : > { %v2617_v38 = vpop.eup %1754  ;;  %v873_v61 = vpop.xlane.xlu1 %872 }
 0x374   : > { %1764 = vpow2.f32 %v955_v37  ;;  %v911_v40 = vsub.f32 %v2512_v39, %v873_v61  ;;  %v912_v42 = vsub.f32 %v2515_v41, %v873_v61  ;;  %v1003_v34 = vadd.f32 %v2617_v38, %v2615_v31 }
 0x375   : > { %1766 = vpow2.f32 %v957_v60 }
 0x376   : > { %v2623_v36 = vpop.eup %1756  ;;  %v959_v43 = vmul.f32 1.442695, %v911_v40  ;;  %v961_v45 = vmul.f32 1.442695, %v912_v42  ;;  %1004 = vadd.xlane.f32.xlu1 %v1003_v34 }
 0x377   : > { %v2625_v63 = vpop.eup %1758  ;;  %v876_v1 = vpop.xlane.xlu1 %875 }
 0x378   : > { %1768 = vpow2.f32 %v959_v43  ;;  %v913_v47 = vsub.f32 %v2520_v44, %v876_v1  ;;  %v914_v48 = vsub.f32 %v2523_v46, %v876_v1  ;;  %v1006_v39 = vadd.f32 %v2625_v63, %v2623_v36 }
 0x379   : > { %1770 = vpow2.f32 %v961_v45 }
 0x37a   : > { %v2631_v41 = vpop.eup %1760  ;;  %v963_v4 = vmul.f32 1.442695, %v913_v47  ;;  %v965_v50 = vmul.f32 1.442695, %v914_v48  ;;  %1007 = vadd.xlane.f32.xlu1 %v1006_v39 }
 0x37b   : > { %v2633_v52 = vpop.eup %1762  ;;  %v879_v55 = vpop.xlane.xlu1 %878 }
 0x37c   : > { %1772 = vpow2.f32 %v963_v4  ;;  %v915_v9 = vsub.f32 %v2528_v49, %v879_v55  ;;  %v916_v11 = vsub.f32 %v2531_v51, %v879_v55  ;;  %v1009_v44 = vadd.f32 %v2633_v52, %v2631_v41 }
 0x37d   : > { %1774 = vpow2.f32 %v965_v50 }
 0x37e   : > { %v2639_v46 = vpop.eup %1764  ;;  %v967_v57 = vmul.f32 1.442695, %v915_v9  ;;  %v969_v16 = vmul.f32 1.442695, %v916_v11  ;;  %1010 = vadd.xlane.f32.xlu1 %v1009_v44 }
 0x37f   : > { %v2641_v58 = vpop.eup %1766  ;;  %v882_v2 = vpop.xlane.xlu1 %881 }
 0x380   : > { %1776 = vpow2.f32 %v967_v57  ;;  %v917_v3 = vsub.f32 %v2536_v54, %v882_v2  ;;  %v918_v7 = vsub.f32 %v2539_v56, %v882_v2  ;;  %v1012_v49 = vadd.f32 %v2641_v58, %v2639_v46 }
 0x381   : > { %1778 = vpow2.f32 %v969_v16 }
 0x382   : > { %v2647_v51 = vpop.eup %1768  ;;  %v971_v19 = vmul.f32 1.442695, %v917_v3  ;;  %v973_v10 = vmul.f32 1.442695, %v918_v7  ;;  %1013 = vadd.xlane.f32.xlu1 %v1012_v49  ;;  %v388_v7 = vld [vmem:[%s2380_s0 + $0x8] sm:$0xff] }
 0x383   : > { %v2649_v12 = vpop.eup %1770  ;;  %v885_v18 = vpop.xlane.xlu1 %884  ;;  %v392_v49 = vld [vmem:[%s2380_s0 + $0x28] sm:$0xff]  ;;  %1151 = vmatprep.mubr.f32.mxu0 %v388_v7 }
 0x384   : > { %1780 = vpow2.f32 %v971_v19  ;;  %v919_v20 = vsub.f32 %v2544_v59, %v885_v18  ;;  %v920_v23 = vsub.f32 %v2547_v0, %v885_v18  ;;  %v1015_v54 = vadd.f32 %v2649_v12, %v2647_v51  ;;  %1161 = vmatprep.mubr.f32.mxu1 %v392_v49 }
 0x385   : > { %1782 = vpow2.f32 %v973_v10 }
 0x386   : > { %v2655_v56 = vpop.eup %1772  ;;  %v975_v24 = vmul.f32 1.442695, %v919_v20  ;;  %v977_v27 = vmul.f32 1.442695, %v920_v23  ;;  %1016 = vadd.xlane.f32.xlu1 %v1015_v54 }
 0x387   : > { %v2657_v28 = vpop.eup %1774  ;;  %v888_v32 = vpop.xlane.xlu1 %887 }
 0x388   : > { %1784 = vpow2.f32 %v975_v24  ;;  %v921_v33 = vsub.f32 %v2552_v5, %v888_v32  ;;  %v922_v35 = vsub.f32 %v2555_v8, %v888_v32  ;;  %v1018_v59 = vadd.f32 %v2657_v28, %v2655_v56 }
 0x389   : > { %1786 = vpow2.f32 %v977_v27 }
 0x38a   : > { %v2663_v0 = vpop.eup %1776  ;;  %v979_v29 = vmul.f32 1.442695, %v921_v33  ;;  %v981_v37 = vmul.f32 1.442695, %v922_v35  ;;  %1019 = vadd.xlane.f32.xlu1 %v1018_v59 }
 0x38b   : > { %v2665_v60 = vpop.eup %1778  ;;  %v891_v61 = vpop.xlane.xlu1 %890 }
 0x38c   : > { %1788 = vpow2.f32 %v979_v29  ;;  %v923_v40 = vsub.f32 %v2560_v13, %v891_v61  ;;  %v924_v42 = vsub.f32 %v2563_v17, %v891_v61  ;;  %v1021_v5 = vadd.f32 %v2665_v60, %v2663_v0 }
 0x38d   : > { %1790 = vpow2.f32 %v981_v37 }
 0x38e   : > { %v2671_v8 = vpop.eup %1780  ;;  %v983_v34 = vmul.f32 1.442695, %v923_v40  ;;  %v985_v43 = vmul.f32 1.442695, %v924_v42  ;;  %1022 = vadd.xlane.f32.xlu1 %v1021_v5 }
 0x38f   : > { %v2673_v45 = vpop.eup %1782  ;;  %v894_v1 = vpop.xlane.xlu1 %893 }
 0x390   : > { %1792 = vpow2.f32 %v983_v34  ;;  %v925_v47 = vsub.f32 %v2568_v22, %v894_v1  ;;  %v926_v48 = vsub.f32 %v2571_v25, %v894_v1  ;;  %v1024_v13 = vadd.f32 %v2673_v45, %v2671_v8 }
 0x391   : > { %1794 = vpow2.f32 %v985_v43 }
 0x392   : > { %v2679_v17 = vpop.eup %1784  ;;  %v987_v39 = vmul.f32 1.442695, %v925_v47  ;;  %v989_v4 = vmul.f32 1.442695, %v926_v48  ;;  %1025 = vadd.xlane.f32.xlu1 %v1024_v13 }
 0x393   : > { %v2681_v50 = vpop.eup %1786 }
 0x394   : > { %1796 = vpow2.f32 %v987_v39  ;;  %v1027_v55 = vadd.f32 %v2681_v50, %v2679_v17 }
 0x395   : > { %1798 = vpow2.f32 %v989_v4 }
 0x396   : > { %v2685_v22 = vpop.eup %1788  ;;  %1028 = vadd.xlane.f32.xlu1 %v1027_v55 }
 0x397   : > { %v2687_v25 = vpop.eup %1790 }
 0x398   : > { %v1030_v9 = vadd.f32 %v2687_v25, %v2685_v22 }
 0x39a   : > { %v2691_v11 = vpop.eup %1792  ;;  %1031 = vadd.xlane.f32.xlu0 %v1030_v9 }
 0x39b   : > { %v2693_v44 = vpop.eup %1794 }
 0x39c   : > { %v1033_v57 = vadd.f32 %v2693_v44, %v2691_v11 }
 0x39e   : > { %v2697_v16 = vpop.eup %1796  ;;  %1034 = vadd.xlane.f32.xlu1 %v1033_v57 }
 0x39f   : > { %v2699_v2 = vpop.eup %1798 }
 0x3a0   : > { %v1036_v3 = vadd.f32 %v2699_v2, %v2697_v16 }
 0x3a2   : > { %1037 = vadd.xlane.f32.xlu0 %v1036_v3 }
 0x3f3   : > { %v993_v19 = vpop.xlane.xlu1 %992 }
 0x3f4   : > { %1800 = vrcp.f32 %v993_v19 }
 0x3f7   : > { %v996_v10 = vpop.xlane.xlu1 %995 }
 0x3f8   : > { %1802 = vrcp.f32 %v996_v10 }
 0x3fb   : > { %v999_v18 = vpop.xlane.xlu1 %998 }
 0x3fc   : > { %1804 = vrcp.f32 %v999_v18 }
 0x3fe   : > { %v1801_v20 = vpop.eup %1800 }
 0x3ff   : > { %v1002_v23 = vpop.xlane.xlu1 %1001  ;;  %v1056_v54 = vmul.f32 %v1801_v20, %v2585_v53  ;;  %v1055_v24 = vmul.f32 %v1801_v20, %v2583_v6 }
 0x400   : > { %1806 = vrcp.f32 %v1002_v23 }
 0x401   : > { %1186 = vst [vmem:[%s2711_s26 + $0x8] sm:$0xff] %v1056_v54  ;;  %1185 = vst [vmem:[%s2711_s26] sm:$0xff] %v1055_v24 }
 0x402   : > { %v1803_v27 = vpop.eup %1802 }
 0x403   : > { %v1005_v32 = vpop.xlane.xlu1 %1004  ;;  %v1058_v33 = vmul.f32 %v1803_v27, %v2593_v62  ;;  %v1057_v35 = vmul.f32 %v1803_v27, %v2591_v14 }
 0x404   : > { %1808 = vrcp.f32 %v1005_v32 }
 0x405   : > { %v1556_v53 = vpack.c.bf16 %v1058_v33, %v1056_v54  ;;  %1188 = vst [vmem:[%s2711_s26 + $0x18] sm:$0xff] %v1058_v33  ;;  %v1558_v6 = vpack.c.bf16 %v1057_v35, %v1055_v24  ;;  %1187 = vst [vmem:[%s2711_s26 + $0x10] sm:$0xff] %v1057_v35 }
 0x406   : > { %v1805_v59 = vpop.eup %1804 }
 0x407   : > { %1557 = vmatprep.subr.bf16.mxu0 %v1556_v53  ;;  %1588 = vmatprep.subr.bf16.mxu1 %v1556_v53  ;;  %v1008_v29 = vpop.xlane.xlu1 %1007  ;;  %v1060_v37 = vmul.f32 %v1805_v59, %v2601_v15  ;;  %v1059_v61 = vmul.f32 %v1805_v59, %v2599_v21 }
 0x408   : > { %1810 = vrcp.f32 %v1008_v29  ;;  %1559 = vmatpush1.bf16.xpose.msra.mxu0 %v1558_v6  ;;  %1596 = vmatpush1.bf16.xpose.msra.mxu1 %v1558_v6 }
 0x409   : > { %1190 = vst [vmem:[%s2711_s26 + $0x28] sm:$0xff] %v1060_v37  ;;  %1189 = vst [vmem:[%s2711_s26 + $0x20] sm:$0xff] %v1059_v61 }
 0x40a   : > { %v1807_v14 = vpop.eup %1806 }
 0x40b   : > { %v1011_v62 = vpop.xlane.xlu1 %1010  ;;  %v1062_v40 = vmul.f32 %v1807_v14, %v2609_v30  ;;  %v1061_v42 = vmul.f32 %v1807_v14, %v2607_v26 }
 0x40c   : > { %1812 = vrcp.f32 %v1011_v62 }
 0x40d   : > { %v1560_v5 = vpack.c.bf16 %v1062_v40, %v1060_v37  ;;  %1192 = vst [vmem:[%s2711_s26 + $0x38] sm:$0xff] %v1062_v40  ;;  %v1562_v34 = vpack.c.bf16 %v1061_v42, %v1059_v61  ;;  %1191 = vst [vmem:[%s2711_s26 + $0x30] sm:$0xff] %v1061_v42  ;;  %v391_v40 = vld [vmem:[%s2380_s0 + $0x20] sm:$0xff]  ;;  %v390_v42 = vld [vmem:[%s2380_s0 + $0x18] sm:$0xff] }
 0x40e   : > { %v1809_v15 = vpop.eup %1808 }
 0x40f   : > { %1561 = vmatprep.subr.bf16.mxu0 %v1560_v5  ;;  %1589 = vmatprep.subr.bf16.mxu1 %v1560_v5  ;;  %v1014_v21 = vpop.xlane.xlu1 %1013  ;;  %v1064_v43 = vmul.f32 %v1809_v15, %v2617_v38  ;;  %v1063_v1 = vmul.f32 %v1809_v15, %v2615_v31  ;;  %v394_v5 = vld [vmem:[%s2380_s0 + $0x38] sm:$0xff] }
 0x410   : > { %1814 = vrcp.f32 %v1014_v21  ;;  %1563 = vmatpush1.bf16.xpose.msra.mxu0 %v1562_v34  ;;  %1597 = vmatpush1.bf16.xpose.msra.mxu1 %v1562_v34 }
 0x411   : > { %1194 = vst [vmem:[%s2711_s26 + $0x48] sm:$0xff] %v1064_v43  ;;  %1193 = vst [vmem:[%s2711_s26 + $0x40] sm:$0xff] %v1063_v1 }
 0x412   : > { %v1811_v26 = vpop.eup %1810 }
 0x413   : > { %v1017_v30 = vpop.xlane.xlu1 %1016  ;;  %v1066_v47 = vmul.f32 %v1811_v26, %v2625_v63  ;;  %v1065_v48 = vmul.f32 %v1811_v26, %v2623_v36 }
 0x414   : > { %1816 = vrcp.f32 %v1017_v30 }
 0x415   : > { %v1564_v13 = vpack.c.bf16 %v1066_v47, %v1064_v43  ;;  %1196 = vst [vmem:[%s2711_s26 + $0x58] sm:$0xff] %v1066_v47  ;;  %v1566_v39 = vpack.c.bf16 %v1065_v48, %v1063_v1  ;;  %1195 = vst [vmem:[%s2711_s26 + $0x50] sm:$0xff] %v1065_v48 }
 0x416   : > { %v1813_v38 = vpop.eup %1812 }
 0x417   : > { %1565 = vmatprep.subr.bf16.mxu0 %v1564_v13  ;;  %1590 = vmatprep.subr.bf16.mxu1 %v1564_v13  ;;  %v1020_v31 = vpop.xlane.xlu1 %1019  ;;  %v1068_v4 = vmul.f32 %v1813_v38, %v2633_v52  ;;  %v1067_v55 = vmul.f32 %v1813_v38, %v2631_v41 }
 0x418   : > { %1818 = vrcp.f32 %v1020_v31  ;;  %1567 = vmatpush1.bf16.xpose.msra.mxu0 %v1566_v39  ;;  %1598 = vmatpush1.bf16.xpose.msra.mxu1 %v1566_v39 }
 0x419   : > { %1198 = vst [vmem:[%s2711_s26 + $0x68] sm:$0xff] %v1068_v4  ;;  %1197 = vst [vmem:[%s2711_s26 + $0x60] sm:$0xff] %v1067_v55 }
 0x41a   : > { %v1815_v36 = vpop.eup %1814 }
 0x41b   : > { %v1023_v63 = vpop.xlane.xlu1 %1022  ;;  %v1070_v9 = vmul.f32 %v1815_v36, %v2641_v58  ;;  %v1069_v57 = vmul.f32 %v1815_v36, %v2639_v46 }
 0x41c   : > { %1820 = vrcp.f32 %v1023_v63 }
 0x41d   : > { %v1568_v3 = vpack.c.bf16 %v1070_v9, %v1068_v4  ;;  %1200 = vst [vmem:[%s2711_s26 + $0x78] sm:$0xff] %v1070_v9  ;;  %v1570_v7 = vpack.c.bf16 %v1069_v57, %v1067_v55  ;;  %1199 = vst [vmem:[%s2711_s26 + $0x70] sm:$0xff] %v1069_v57 }
 0x41e   : > { %v1817_v52 = vpop.eup %1816 }
 0x41f   : > { %1569 = vmatprep.subr.bf16.mxu0 %v1568_v3  ;;  %1591 = vmatprep.subr.bf16.mxu1 %v1568_v3  ;;  %v1026_v41 = vpop.xlane.xlu1 %1025  ;;  %v1072_v49 = vmul.f32 %v1817_v52, %v2649_v12  ;;  %v1071_v19 = vmul.f32 %v1817_v52, %v2647_v51 }
 0x420   : > { %1822 = vrcp.f32 %v1026_v41  ;;  %1571 = vmatpush1.bf16.xpose.msra.mxu0 %v1570_v7  ;;  %1599 = vmatpush1.bf16.xpose.msra.mxu1 %v1570_v7 }
 0x421   : > { %1202 = vst [vmem:[%s2711_s26 + $0x88] sm:$0xff] %v1072_v49  ;;  %1201 = vst [vmem:[%s2711_s26 + $0x80] sm:$0xff] %v1071_v19 }
 0x422   : > { %v1819_v46 = vpop.eup %1818 }
 0x423   : > { %v1029_v58 = vpop.xlane.xlu1 %1028  ;;  %v1074_v10 = vmul.f32 %v1819_v46, %v2657_v28  ;;  %v1073_v18 = vmul.f32 %v1819_v46, %v2655_v56 }
 0x424   : > { %1824 = vrcp.f32 %v1029_v58 }
 0x425   : > { %v1572_v20 = vpack.c.bf16 %v1074_v10, %v1072_v49  ;;  %1204 = vst [vmem:[%s2711_s26 + $0x98] sm:$0xff] %v1074_v10  ;;  %v1574_v23 = vpack.c.bf16 %v1073_v18, %v1071_v19  ;;  %1203 = vst [vmem:[%s2711_s26 + $0x90] sm:$0xff] %v1073_v18 }
 0x426   : > { %v1821_v12 = vpop.eup %1820 }
 0x427   : > { %1573 = vmatprep.subr.bf16.mxu0 %v1572_v20  ;;  %1592 = vmatprep.subr.bf16.mxu1 %v1572_v20  ;;  %v1032_v51 = vpop.xlane.xlu0 %1031  ;;  %v1076_v54 = vmul.f32 %v1821_v12, %v2665_v60  ;;  %v1075_v24 = vmul.f32 %v1821_v12, %v2663_v0 }
 0x428   : > { %1826 = vrcp.f32 %v1032_v51  ;;  %1575 = vmatpush1.bf16.xpose.msra.mxu0 %v1574_v23  ;;  %1600 = vmatpush1.bf16.xpose.msra.mxu1 %v1574_v23 }
 0x429   : > { %1206 = vst [vmem:[%s2711_s26 + $0xa8] sm:$0xff] %v1076_v54  ;;  %1205 = vst [vmem:[%s2711_s26 + $0xa0] sm:$0xff] %v1075_v24 }
 0x42a   : > { %v1823_v56 = vpop.eup %1822 }
 0x42b   : > { %v1035_v28 = vpop.xlane.xlu1 %1034  ;;  %v1078_v27 = vmul.f32 %v1823_v56, %v2673_v45  ;;  %v1077_v32 = vmul.f32 %v1823_v56, %v2671_v8 }
 0x42c   : > { %1828 = vrcp.f32 %v1035_v28 }
 0x42d   : > { %v1576_v33 = vpack.c.bf16 %v1078_v27, %v1076_v54  ;;  %1208 = vst [vmem:[%s2711_s26 + $0xb8] sm:$0xff] %v1078_v27  ;;  %v1578_v35 = vpack.c.bf16 %v1077_v32, %v1075_v24  ;;  %1207 = vst [vmem:[%s2711_s26 + $0xb0] sm:$0xff] %v1077_v32 }
 0x42e   : > { %v1825_v0 = vpop.eup %1824 }
 0x42f   : > { %1577 = vmatprep.subr.bf16.mxu0 %v1576_v33  ;;  %1593 = vmatprep.subr.bf16.mxu1 %v1576_v33  ;;  %v1038_v60 = vpop.xlane.xlu0 %1037  ;;  %v1080_v53 = vmul.f32 %v1825_v0, %v2681_v50  ;;  %v1079_v6 = vmul.f32 %v1825_v0, %v2679_v17 }
 0x430   : > { %1830 = vrcp.f32 %v1038_v60  ;;  %1579 = vmatpush1.bf16.xpose.msra.mxu0 %v1578_v35  ;;  %1601 = vmatpush1.bf16.xpose.msra.mxu1 %v1578_v35 }
 0x431   : > { %1210 = vst [vmem:[%s2711_s26 + $0xc8] sm:$0xff] %v1080_v53  ;;  %1209 = vst [vmem:[%s2711_s26 + $0xc0] sm:$0xff] %v1079_v6 }
 0x432   : > { %v1827_v8 = vpop.eup %1826 }
 0x433   : > { %v1082_v45 = vmul.f32 %v1827_v8, %v2687_v25  ;;  %v1081_v59 = vmul.f32 %v1827_v8, %v2685_v22 }
 0x435   : > { %v1580_v29 = vpack.c.bf16 %v1082_v45, %v1080_v53  ;;  %1212 = vst [vmem:[%s2711_s26 + $0xd8] sm:$0xff] %v1082_v45  ;;  %v1582_v37 = vpack.c.bf16 %v1081_v59, %v1079_v6  ;;  %1211 = vst [vmem:[%s2711_s26 + $0xd0] sm:$0xff] %v1081_v59 }
 0x436   : > { %v1829_v50 = vpop.eup %1828 }
 0x437   : > { %1581 = vmatprep.subr.bf16.mxu0 %v1580_v29  ;;  %1594 = vmatprep.subr.bf16.mxu1 %v1580_v29  ;;  %v1084_v17 = vmul.f32 %v1829_v50, %v2693_v44  ;;  %v1083_v61 = vmul.f32 %v1829_v50, %v2691_v11  ;;  %v387_v11 = vld [vmem:[%s2380_s0] sm:$0xff] }
 0x438   : > { %1583 = vmatpush1.bf16.xpose.msra.mxu0 %v1582_v37  ;;  %1602 = vmatpush1.bf16.xpose.msra.mxu1 %v1582_v37 }
 0x439   : > { %1214 = vst [vmem:[%s2711_s26 + $0xe8] sm:$0xff] %v1084_v17  ;;  %1213 = vst [vmem:[%s2711_s26 + $0xe0] sm:$0xff] %v1083_v61 }
 0x43a   : > { %v1831_v22 = vpop.eup %1830 }
 0x43b   : > { %v1086_v25 = vmul.f32 %v1831_v22, %v2699_v2  ;;  %v1085_v14 = vmul.f32 %v1831_v22, %v2697_v16  ;;  %v389_v16 = vld [vmem:[%s2380_s0 + $0x10] sm:$0xff] }
 0x43c   : > { %v393_v2 = vld [vmem:[%s2380_s0 + $0x30] sm:$0xff]  ;;  %s2096_s0 = smov [#allocation10]  }
 0x43d   : > { %v1584_v62 = vpack.c.bf16 %v1086_v25, %v1084_v17  ;;  %1216 = vst [vmem:[%s2711_s26 + $0xf8] sm:$0xff] %v1086_v25  ;;  %v1586_v44 = vpack.c.bf16 %v1085_v14, %v1083_v61  ;;  %1215 = vst [vmem:[%s2711_s26 + $0xf0] sm:$0xff] %v1085_v14  ;;  %s1928_s17 = sshll.u32 %s2096_s0, 4  ;;  %s1929_s17 = int_to_ptr.vmem [resolvable:$false] %s1928_s17 }
 0x43e   : > { %s1930_s19 = scalar_lea.vmem %s1929_s17, 8192  ;;  %p1931_p1 = scmp.lt.s32.totalorder %s2784_s6, %s1929_s17 }
 0x43f   : > { %1585 = vmatprep.subr.bf16.mxu0 %v1584_v62  ;;  %1595 = vmatprep.subr.bf16.mxu1 %v1584_v62  ;;  %p1932_p10 = scmp.lt.s32.totalorder %s1930_s19, %s1924_s14 }
 0x440   : > { %1587 = vmatpush1.bf16.xpose.msra.mxu0 %v1586_v44  ;;  %1603 = vmatpush1.bf16.xpose.msra.mxu1 %v1586_v44 }
 0x441   : > { %p1933_p3 = por %p1932_p10, %p1931_p1 }
 0x443   : > { %p1934_p9 = pnand %p1933_p3, %p1927_p12 }
 0x447   : > { %1152 = vmatmul.mubr.f32.vlgmr.msra.gmra.mrb[16].mxu0 %v387_v11  ;;  %1162 = vmatmul.mubr.f32.vlgmr.msra.gmra.mrb[32].mxu1 %v391_v40 }
 0x448   : > { %1156 = vmatprep.mubr.f32.mxu0 %v390_v42  ;;  %1166 = vmatprep.mubr.f32.mxu1 %v394_v5 }
 0x44b   : > { %1157 = vmatmul.mubr.f32.gmra.mrb[18].mxu0 %v389_v16  ;;  %1167 = vmatmul.mubr.f32.gmra.mrb[34].mxu1 %v393_v2 }
 0x44c   : > { %1937 = shalt.err (!%p1934_p9)
}
 0x44d   : > { %s1938_s21 = scalar_lea.hbm %s2789_s9, 4096  ;;  %s1942_s5 = scalar_lea.hbm %s2936_s18, 16384 }
 0x44e   : > { %p1939_p11 = scmp.ne.s32.totalorder %s2789_s9, %s1938_s21  ;;  %p1943_p4 = scmp.lt.u32.totalorder %s2789_s9, %s2936_s18 }
 0x44f   : > { %p1944_p13 = scmp.lt.u32.totalorder %s1942_s5, %s1938_s21  ;;  %p1946_p2 = scmp.lt.u32.totalorder %s1938_s21, %s2789_s9 }
 0x450   : > { %p1940_p6 = pnand %p1939_p11, %p2937_p5 }
 0x451   : > { %p1945_p0 = por %p1944_p13, %p1943_p4 }
 0x452   : > { %p1941_p7 = pneg %p1940_p6 }
 0x453   : > { %p1947_p8 = por %p1946_p2, %p1945_p0 }
 0x455   : > { %p1948_p12 = pnand %p1947_p8, %p1941_p7 }
 0x457   : > { %1951 = shalt.err (!%p1948_p12)
}
 0x458   : > { %s2097_s11 = smov 256   ;;  %s2098_s15 = smov 16   ;;  %v1832_v47 = vld [vmem:[%s2392_s16] sm:$0xff]  ;;  %v1834_v9 = vld [vmem:[%s2392_s16 + $0x10] sm:$0xff] }
 0x459   : > { %1613 = dma.vmem_to_hbm [thread:$0]  (%p2937_p5), %s2784_s6, 4096, %s2789_s9, %s1223_s12, %s2097_s11, %s2097_s11, %s2098_s15  }
 0x45a   : > { %s400_s23 = sld [smem:[#allocation2]]  ;;  %s1477_s14 = sshll.u32 %s2074_s29, 3  ;;  %v1833_v13 = vld [vmem:[%s2392_s16 + $0x20] sm:$0xff]  ;;  %v1835_v3 = vld [vmem:[%s2392_s16 + $0x30] sm:$0xff] }
 0x45b   : > { %s1438_s0 = sshll.u32 %s2706_s20, 5  ;;  %s1234_s17 = sadd.s32 %s2070_s4, %s1477_s14 }
 0x45c   : > { %s357_s19 = scalar_lea.vmem [#allocation9], %s1438_s0  ;;  %s1478_s6 = sshll.u32 %s1234_s17, 7 }
 0x45d   : > { %s1237_s21 = sshll.u32 %s357_s19, 4  ;;  %s2938_s9 = sld [smem:[#allocation25_spill]]  ;;  %s2822_s21 = int_to_ptr.vmem [resolvable:$true] %s1237_s21 }
 0x45e   : > { %s1218_s26 = scalar_lea.sflag [#allocation5], %s2706_s20  ;;  %s1952_s3 = scalar_lea.vmem %s2822_s21, 512 }
 0x45f   : > { %p1953_p1 = scmp.ne.s32.totalorder %s2822_s21, %s1952_s3  ;;  %s2099_s5 = smov [#allocation9]  }
 0x460   : > { %v1172_v34 = vstv %s400_s23  ;;  %s1956_s22 = sshll.u32 %s2099_s5, 4  ;;  %s1957_s22 = int_to_ptr.vmem [resolvable:$false] %s1956_s22 }
 0x461   : > { %p1954_p10 = pnand %p1953_p1, %p2937_p5  ;;  %s1958_s10 = scalar_lea.vmem %s1957_s22, 1024 }
 0x462   : > { %p1959_p9 = scmp.lt.s32.totalorder %s2822_s21, %s1957_s22  ;;  %p1960_p11 = scmp.lt.s32.totalorder %s1958_s10, %s1952_s3 }
 0x463   : > { %s2827_s12 = scalar_lea.hbm %s2938_s9, %s1478_s6  ;;  %p1955_p3 = pneg %p1954_p10 }
 0x464   : > { %p1961_p6 = por %p1960_p11, %p1959_p9 }
 0x466   : > { %p1962_p7 = pnand %p1961_p6, %p1955_p3 }
 0x51a   : > { %v1153_v15 = vpop.f32.mrb[16].mxu0  ;;  %v1163_v21 = vpop.f32.mrb[32].mxu1 }
 0x51b   : > { %v1173_v43 = vmul.f32 %v1172_v34, %v1153_v15  ;;  %v1175_v1 = vmul.f32 %v1172_v34, %v1163_v21  ;;  %v1155_v26 = vpop.f32.mrb[17].mxu0  ;;  %v1165_v30 = vpop.f32.mrb[33].mxu1 }
 0x51d   : > { %v1177_v48 = vadd.f32 %v1832_v47, %v1173_v43  ;;  %v1179_v39 = vadd.f32 %v1833_v13, %v1175_v1 }
 0x51e   : > { %v1158_v38 = vpop.f32.mrb[18].mxu0  ;;  %v1168_v31 = vpop.f32.mrb[34].mxu1 }
 0x51f   : > { %1181 = vst [vmem:[%s357_s19] sm:$0xff] %v1177_v48  ;;  %1183 = vst [vmem:[%s357_s19 + $0x10] sm:$0xff] %v1179_v39  ;;  %v1174_v4 = vmul.f32 %v1172_v34, %v1158_v38  ;;  %v1176_v55 = vmul.f32 %v1172_v34, %v1168_v31  ;;  %v1160_v36 = vpop.f32.mrb[19].mxu0  ;;  %v1170_v63 = vpop.f32.mrb[35].mxu1 }
 0x521   : > { %v1178_v57 = vadd.f32 %v1834_v9, %v1174_v4  ;;  %v1180_v7 = vadd.f32 %v1835_v3, %v1176_v55 }
 0x523   : > { %1182 = vst [vmem:[%s357_s19 + $0x8] sm:$0xff] %v1178_v57  ;;  %1184 = vst [vmem:[%s357_s19 + $0x18] sm:$0xff] %v1180_v7 }
 0x524   : > { %1965 = shalt.err (!%p1962_p7)
}
 0x525   : > { %s1966_s16 = scalar_lea.hbm %s2827_s12, 512  ;;  %s1970_s14 = scalar_lea.hbm %s2938_s9, 2048 }
 0x526   : > { %p1967_p4 = scmp.ne.s32.totalorder %s2827_s12, %s1966_s16  ;;  %p1971_p2 = scmp.lt.u32.totalorder %s2827_s12, %s2938_s9 }
 0x527   : > { %p1972_p8 = scmp.lt.u32.totalorder %s1970_s14, %s1966_s16  ;;  %p1974_p1 = scmp.lt.u32.totalorder %s1966_s16, %s2827_s12 }
 0x528   : > { %p1968_p13 = pnand %p1967_p4, %p2937_p5 }
 0x529   : > { %p1973_p12 = por %p1972_p8, %p1971_p2 }
 0x52a   : > { %p1969_p0 = pneg %p1968_p13 }
 0x52b   : > { %p1975_p10 = por %p1974_p1, %p1973_p12 }
 0x52d   : > { %p1976_p3 = pnand %p1975_p10, %p1969_p0 }
 0x52f   : > { %1979 = shalt.err (!%p1976_p3)
}
 0x530   : > { %s2100_s19 = smov 128   ;;  %s2101_s6 = smov 8  }
 0x531   : > { %1612 = dma.vmem_to_hbm [thread:$0]  (%p2937_p5), %s2822_s21, 512, %s2827_s12, %s1218_s26, %s2100_s19, %s2097_s11, %s2101_s6  }
 0x532 PF: > { %s2939_s4 = sld [smem:[#allocation17_spill]]  ;;  %s2940_s29 = sld [smem:[#allocation19_spill]] }
 0x533   : > { %p1637_p9 = scmp.ge.s32.totalorder %s2086_s8, 2 }
 0x538   : > { %s1271_s3 = sand.u32 1, %s2939_s4   ;;  %p2941_p11 = scmp.ne.s32.totalorder %s2940_s29, 0 }
 0x539   : > { %s1272_s5 = scalar_lea.sflag [#allocation5], %s1271_s3 }
 0x53a   : > { %p1628_p6 = pnand %p1637_p9, %p2941_p11 }
 0x53c   : > { %2037 = dma.done.wait (!%p1628_p6), %s1272_s5, 512  }
 0x53d   : > { %2039 = vsyncadd (!%p1628_p6), %s1272_s5, 4294966784  ;;  %s1281_s22 = scalar_lea.sflag [#allocation11], %s1271_s3 }
 0x53e   : > { %2041 = dma.done.wait (!%p1628_p6), %s1281_s22, 4096  }
 0x53f   : > { %2043 = vsyncadd (!%p1628_p6), %s1281_s22, 4294963200  ;;  %s30_s8 = sadd.s32 1, %s2086_s8   ;;  %s2942_s13 = sld [smem:[#allocation22_spill]] }
 0x540   : > { %p27_p7 = scmp.ge.s32.totalorder %s30_s8, 6   ;;  %s2943_s4 = sld [smem:[#allocation18_spill]] }
 0x541   : > { %s2944_s20 = sld [smem:[#allocation20_spill]]  ;;  %s2945_s11 = sld [smem:[#allocation21_spill]] }
 0x542   : > { %s2946_s23 = smov %s2050_s24  ;;  %s2947_s24 = smov %s2054_s25 }
 0x543   : > { %s2948_s25 = smov %s2279_s30  ;;  %s2949_s26 = smov %s2062_s27 }
 0x544   : > { %s2950_s27 = smov %s2066_s28  ;;  %s2952_s29 = smov %s2082_s7 }
 0x545   : > { %s2951_s28 = smov %s2942_s13  ;;  %29 = sbr.rel (!%p27_p7) target bundleno = 19 (0x13), region = 123 }
 0x547   : > { %s2953_s30 = smov %s2944_s20  ;;  %s2954_s7 = smov %s2945_s11 }
 0x54c   :  { %1286 = vsyncpa [#allocation4], 1 }
 0x54d   :  { %1288 = vsyncpa [#allocation4 + $0x1], 1 }
 0x54e   :  { %1289 = vsyncpa [#allocation7], 1 }
 0x54f   :  { %1291 = vsyncpa [#allocation7 + $0x1], 1 }
 0x550   :  { %1292 = vsyncpa [#allocation5], 1 }
 0x551   :  { %1294 = vsyncpa [#allocation5 + $0x1], 1 }
 0x552   :  { %1295 = vsyncpa [#allocation11], 1 }
 0x553   :  { %1297 = vsyncpa [#allocation11 + $0x1], 1 }

</bundles_post_ra>
